<compile_context>
chip_gen: v5e
topology: v5e:2x2
jax: 0.10.0
libtpu: 0.0.40
codegen_flags: <defaults>
</compile_context>

<pallas_src>
import numpy as np
import jax
import jax.numpy as jnp
from jax import lax
from jax.experimental import pallas as pl
from jax.experimental.pallas import tpu as pltpu

# ---------------- small, module-consistent shapes ----------------
B, T, C, H, W = 2, 2, 3, 16, 16          # batch, time, rgb, spatial
NUM_VIEWS = 2                            # agentview_rgb, eye_in_hand_rgb
C_TOT = C * NUM_VIEWS
TC = T * C_TOT                           # channels folded with time per batch elem
TRANSLATION = 4                          # cfg.policy.translation_aug translation
PAD = TRANSLATION // 2
HP, WP = H + 2 * PAD, W + 2 * PAD        # replication-padded spatial dims
N = B * T

_GRAY_W = (0.2989, 0.587, 0.114)         # torchvision rgb_to_grayscale weights


# ---------------- Pallas kernel: DataAugGroup forward -----------------
def _aug_kernel(cpar_ref, tpar_ref, x_ref, o_ref):
    """One grid step = one batch element (all T time steps).
    x_ref: (1, T*C_TOT, HP, WP) f32 replication-padded images in VMEM.
    o_ref: (1, T*C_TOT, H, W)   f32 augmented output.
    cpar_ref: (B, 3) f32 SMEM [brightness, contrast, saturation] per batch elem.
    tpar_ref: (B, 2) i32 SMEM [dy, dx] crop offsets per batch elem."""
    b = pl.program_id(0)
    bright = cpar_ref[b, 0]
    con = cpar_ref[b, 1]
    sat = cpar_ref[b, 2]
    dy = tpar_ref[b, 0]
    dx = tpar_ref[b, 1]

    # ---- contrast mean: grayscale mean of the brightness-adjusted ORIGINAL
    # image, i.e. the interior region of the replication-padded block ----
    x_pad = x_ref[0]                                          # (TC, HP, WP)
    xb = jnp.clip(x_pad * bright, 0.0, 1.0)
    xb5 = xb.reshape(T, NUM_VIEWS, C, HP, WP)                 # major-dim split: free
    gray_pad = (_GRAY_W[0] * xb5[:, :, 0] + _GRAY_W[1] * xb5[:, :, 1]
                + _GRAY_W[2] * xb5[:, :, 2])                  # (T, V, HP, WP)
    row = lax.broadcasted_iota(jnp.int32, (HP, WP), 0)
    col = lax.broadcasted_iota(jnp.int32, (HP, WP), 1)
    interior = ((row >= PAD) & (row < PAD + H)
                & (col >= PAD) & (col < PAD + W)).astype(jnp.float32)
    mean = jnp.sum(jnp.sum(gray_pad * interior, axis=-1, keepdims=True),
                   axis=-2, keepdims=True) * (1.0 / (H * W))  # (T, V, 1, 1)
    mean = mean[:, :, None]                                   # (T, V, 1, 1, 1)

    # ---- TranslationAug: shifted-window read of the padded block ----
    # rows: dynamic sublane slice straight off the input ref
    xr = x_ref[0, :, pl.ds(dy, H), :]                         # (TC, H, WP)
    # cols: (2*PAD + 1)-way static-shift select chain (exact, no MXU)
    xc = xr[:, :, 0:W]
    for k in range(1, 2 * PAD + 1):
        xc = jnp.where(dx == k, xr[:, :, k:k + W], xc)
    y = xc.reshape(T, NUM_VIEWS, C, H, W)                     # free (16 % 8 == 0)

    # ---- BatchWiseImgColorJitterAug: brightness -> contrast -> saturation ----
    y = jnp.clip(y * bright, 0.0, 1.0)
    y = jnp.clip(con * y + (1.0 - con) * mean, 0.0, 1.0)
    gray2 = (_GRAY_W[0] * y[:, :, 0] + _GRAY_W[1] * y[:, :, 1]
             + _GRAY_W[2] * y[:, :, 2])[:, :, None]           # (T, V, 1, H, W)
    y = jnp.clip(sat * y + (1.0 - sat) * gray2, 0.0, 1.0)

    o_ref[0] = y.reshape(TC, H, W)


def img_aug_group(img_tuple, cparams, tparams):
    """DataAugGroup.forward: cat views along channel, jitter + translate, split."""
    x = jnp.concatenate(img_tuple, axis=-3)                   # (B, T, C_TOT, H, W)
    x = x.reshape(B, TC, H, W).astype(jnp.float32)
    # ReplicationPad2d(PAD) hoisted to the wrapper (review-preferred path):
    xp = jnp.pad(x, ((0, 0), (0, 0), (PAD, PAD), (PAD, PAD)), mode="edge")

    out = pl.pallas_call(
        _aug_kernel,
        out_shape=jax.ShapeDtypeStruct((B, TC, H, W), jnp.float32),
        grid_spec=pl.GridSpec(
            grid=(B,),                                        # one step per batch elem
            in_specs=[
                pl.BlockSpec(memory_space=pltpu.MemorySpace.SMEM),   # color factors
                pl.BlockSpec(memory_space=pltpu.MemorySpace.SMEM),   # crop offsets
                pl.BlockSpec((1, TC, HP, WP), lambda b: (b, 0, 0, 0)),
            ],
            out_specs=pl.BlockSpec((1, TC, H, W), lambda b: (b, 0, 0, 0)),
        ),
        compiler_params=pltpu.CompilerParams(dimension_semantics=("parallel",)),
    )(cparams, tparams, xp)

    out = out.reshape(B, T, C_TOT, H, W)
    return tuple(out[:, :, v * C:(v + 1) * C] for v in range(NUM_VIEWS))


# ---------------- BasePolicy mirror ----------------
class BasePolicyPallas:
    """Mirror of LIBERO BasePolicy: owns img_aug = (color_aug, translation_aug)
    and preprocess_input.  forward()/get_action() are NotImplemented upstream."""

    image_encoder_names = ("agentview_rgb", "eye_in_hand_rgb")

    def __init__(self, key, epsilon=0.05, jitter=0.3, translation=TRANSLATION):
        kb, kc, ks, ke, ky, kx = jax.random.split(key, 6)
        # BatchWiseImgColorJitterAug: per-batch-element factors, applied with
        # probability (1 - epsilon); non-applied samples get identity factors.
        # TODO(synk): reference augs resample per forward call; here they are
        #             sampled once at construction time.
        apply = (jax.random.uniform(ke, (B,)) > epsilon).astype(jnp.float32)

        def factor(k):
            f = jax.random.uniform(k, (B,), minval=1.0 - jitter, maxval=1.0 + jitter)
            return apply * f + (1.0 - apply)

        self.cparams = jnp.stack(
            [factor(kb), factor(kc), factor(ks)], axis=1).astype(jnp.float32)  # (B, 3)

        # TranslationAug: per-batch crop offset in [0, translation], shared over T.
        dy = jax.random.randint(ky, (B,), 0, translation + 1)
        dx = jax.random.randint(kx, (B,), 0, translation + 1)
        self.tparams = jnp.stack([dy, dx], axis=1).astype(jnp.int32)           # (B, 2)

        self.use_augmentation = True

    # ---- same structure as the torch module ----
    def _get_img_tuple(self, data):
        return tuple(data["obs"][n] for n in self.image_encoder_names)

    def _get_aug_output_dict(self, out):
        return {n: out[idx] for idx, n in enumerate(self.image_encoder_names)}

    def preprocess_input(self, data, train_mode=True):
        if train_mode:
            if self.use_augmentation:
                img_tuple = self._get_img_tuple(data)
                aug_out = self._get_aug_output_dict(
                    img_aug_group(img_tuple, self.cparams, self.tparams))
                for n in self.image_encoder_names:
                    data["obs"][n] = aug_out[n]
            return data
        # eval mode: unsqueeze a time dim everywhere, squeeze task_emb back
        data = jax.tree_util.tree_map(lambda x: jnp.expand_dims(x, 1), data)
        data["task_emb"] = jnp.squeeze(data["task_emb"], 1)
        return data

    def forward(self, data):
        raise NotImplementedError

    def get_action(self, data):
        raise NotImplementedError

    def reset(self):
        pass


# ---------------- pure-JAX reference for verification ----------------
def _reference(x, cparams, tparams):
    """x: (N, C_TOT, H, W); cparams: (N, 3); tparams: (N, 2)."""
    b = cparams[:, 0][:, None, None, None]
    c = cparams[:, 1][:, None, None, None]
    s = cparams[:, 2][:, None, None, None]
    y = jnp.clip(x * b, 0.0, 1.0)
    groups = []
    for g in range(NUM_VIEWS):
        rgb = y[:, 3 * g:3 * g + 3]
        gray = _GRAY_W[0] * rgb[:, 0] + _GRAY_W[1] * rgb[:, 1] + _GRAY_W[2] * rgb[:, 2]
        mean = gray.mean(axis=(1, 2))[:, None, None, None]
        rgb = jnp.clip(c * rgb + (1.0 - c) * mean, 0.0, 1.0)
        gray2 = (_GRAY_W[0] * rgb[:, 0] + _GRAY_W[1] * rgb[:, 1]
                 + _GRAY_W[2] * rgb[:, 2])[:, None]
        rgb = jnp.clip(s * rgb + (1.0 - s) * gray2, 0.0, 1.0)
        groups.append(rgb)
    y = jnp.concatenate(groups, axis=1)
    dy, dx = tparams[:, 0], tparams[:, 1]
    h_src = jnp.clip(jnp.arange(H)[None, :] + dy[:, None] - PAD, 0, H - 1)
    w_src = jnp.clip(jnp.arange(W)[None, :] + dx[:, None] - PAD, 0, W - 1)

    def gather_one(img, hs, ws):
        return img[:, hs, :][:, :, ws]

    return jax.vmap(gather_one)(y, h_src, w_src)


if __name__ == "__main__":
    key = jax.random.PRNGKey(0)
    k_pol, k_img1, k_img2, k_act, k_emb = jax.random.split(key, 5)

    policy = BasePolicyPallas(k_pol)

    data = {
        "obs": {
            "agentview_rgb":   jax.random.uniform(k_img1, (B, T, C, H, W), jnp.float32),
            "eye_in_hand_rgb": jax.random.uniform(k_img2, (B, T, C, H, W), jnp.float32),
        },
        "actions":  jax.random.normal(k_act, (B, T, 7), jnp.float32),
        "task_emb": jax.random.normal(k_emb, (B, 768), jnp.float32),
    }

    # keep references to the raw observations (preprocess_input overwrites them)
    orig_a = data["obs"]["agentview_rgb"]
    orig_e = data["obs"]["eye_in_hand_rgb"]

    out = policy.preprocess_input(data, train_mode=True)
    a = jax.block_until_ready(out["obs"]["agentview_rgb"])
    e = jax.block_until_ready(out["obs"]["eye_in_hand_rgb"])

    # verify against a pure-JAX reference of the same augmentation pipeline,
    # built from the SAME input tensors that went into the kernel.
    x_in = jnp.concatenate([orig_a, orig_e], axis=-3).reshape(N, C_TOT, H, W)
    cpar_n = jnp.repeat(policy.cparams, T, axis=0)      # per-sample view of B params
    tpar_n = jnp.repeat(policy.tparams, T, axis=0)
    ref = _reference(x_in, cpar_n, tpar_n).reshape(B, T, C_TOT, H, W)

    np.testing.assert_allclose(np.asarray(a), np.asarray(ref[:, :, 0:3]),
                               rtol=1e-4, atol=1e-4)
    np.testing.assert_allclose(np.asarray(e), np.asarray(ref[:, :, 3:6]),
                               rtol=1e-4, atol=1e-4)

    assert a.shape == (B, T, C, H, W) and e.shape == (B, T, C, H, W)
    print("KERNEL_OK")
</pallas_src>

<mosaic_0001>
module attributes {stable_mosaic.version = 11 : i64} {
  func.func @_aug_kernel(%arg0: i32, %arg1: memref<2x3xf32, #tpu.memory_space<smem>>, %arg2: memref<2x2xi32, #tpu.memory_space<smem>>, %arg3: memref<1x12x20x20xf32, #tpu.memory_space<vmem>>, %arg4: memref<1x12x16x16xf32, #tpu.memory_space<vmem>>) attributes {dimension_semantics = [#tpu.dimension_semantics<parallel>], iteration_bounds = array<i64: 2>, scalar_prefetch = 0 : i64, scratch_operands = 0 : i64, tpu.core_type = #tpu.core_type<tc>, window_params = [{transform_indices = @transform_0, window_bounds = array<i64: 2, 3>}, {transform_indices = @transform_1, window_bounds = array<i64: 2, 2>}, {transform_indices = @transform_2, window_bounds = array<i64: 1, 12, 20, 20>}, {transform_indices = @transform_3, window_bounds = array<i64: 1, 12, 16, 16>}]} {
    %0 = arith.index_cast %arg0 : i32 to index
    %c0 = arith.constant 0 : index
    %1 = memref.load %arg1[%0, %c0] : memref<2x3xf32, #tpu.memory_space<smem>>
    %2 = arith.index_cast %arg0 : i32 to index
    %c1 = arith.constant 1 : index
    %3 = memref.load %arg1[%2, %c1] : memref<2x3xf32, #tpu.memory_space<smem>>
    %4 = arith.index_cast %arg0 : i32 to index
    %c2 = arith.constant 2 : index
    %5 = memref.load %arg1[%4, %c2] : memref<2x3xf32, #tpu.memory_space<smem>>
    %6 = arith.index_cast %arg0 : i32 to index
    %c0_0 = arith.constant 0 : index
    %7 = memref.load %arg2[%6, %c0_0] : memref<2x2xi32, #tpu.memory_space<smem>>
    %8 = arith.index_cast %arg0 : i32 to index
    %c1_1 = arith.constant 1 : index
    %9 = memref.load %arg2[%8, %c1_1] : memref<2x2xi32, #tpu.memory_space<smem>>
    %c0_2 = arith.constant 0 : index
    %c0_3 = arith.constant 0 : index
    %c0_4 = arith.constant 0 : index
    %c0_5 = arith.constant 0 : index
    %10 = vector.load %arg3[%c0_2, %c0_3, %c0_4, %c0_5] : memref<1x12x20x20xf32, #tpu.memory_space<vmem>>, vector<1x12x20x20xf32>
    %11 = vector.shape_cast %10 : vector<1x12x20x20xf32> to vector<12x20x20xf32>
    %12 = vector.broadcast %1 : f32 to vector<12x20x20xf32>
    %13 = arith.mulf %11, %12 : vector<12x20x20xf32>
    %cst = arith.constant 0.000000e+00 : f32
    %cst_6 = arith.constant 1.000000e+00 : f32
    %14 = vector.broadcast %cst : f32 to vector<12x20x20xf32>
    %15 = arith.maximumf %14, %13 : vector<12x20x20xf32>
    %16 = vector.broadcast %cst_6 : f32 to vector<12x20x20xf32>
    %17 = arith.minimumf %16, %15 : vector<12x20x20xf32>
    %18 = vector.shape_cast %17 : vector<12x20x20xf32> to vector<2x2x3x20x20xf32>
    %19 = vector.extract_strided_slice %18 {offsets = [0, 0, 0, 0, 0], sizes = [2, 2, 1, 20, 20], strides = [1, 1, 1, 1, 1]} : vector<2x2x3x20x20xf32> to vector<2x2x1x20x20xf32>
    %20 = vector.shape_cast %19 : vector<2x2x1x20x20xf32> to vector<2x2x20x20xf32>
    %cst_7 = arith.constant 2.989000e-01 : f32
    %21 = vector.broadcast %cst_7 : f32 to vector<2x2x20x20xf32>
    %22 = arith.mulf %21, %20 : vector<2x2x20x20xf32>
    %23 = vector.extract_strided_slice %18 {offsets = [0, 0, 1, 0, 0], sizes = [2, 2, 1, 20, 20], strides = [1, 1, 1, 1, 1]} : vector<2x2x3x20x20xf32> to vector<2x2x1x20x20xf32>
    %24 = vector.shape_cast %23 : vector<2x2x1x20x20xf32> to vector<2x2x20x20xf32>
    %cst_8 = arith.constant 5.870000e-01 : f32
    %25 = vector.broadcast %cst_8 : f32 to vector<2x2x20x20xf32>
    %26 = arith.mulf %25, %24 : vector<2x2x20x20xf32>
    %27 = arith.addf %22, %26 : vector<2x2x20x20xf32>
    %28 = vector.extract_strided_slice %18 {offsets = [0, 0, 2, 0, 0], sizes = [2, 2, 1, 20, 20], strides = [1, 1, 1, 1, 1]} : vector<2x2x3x20x20xf32> to vector<2x2x1x20x20xf32>
    %29 = vector.shape_cast %28 : vector<2x2x1x20x20xf32> to vector<2x2x20x20xf32>
    %cst_9 = arith.constant 1.140000e-01 : f32
    %30 = vector.broadcast %cst_9 : f32 to vector<2x2x20x20xf32>
    %31 = arith.mulf %30, %29 : vector<2x2x20x20xf32>
    %32 = arith.addf %27, %31 : vector<2x2x20x20xf32>
    %33 = tpu.iota {dimensions = array<i32: 0>} : vector<20x20xi32>
    %34 = tpu.iota {dimensions = array<i32: 1>} : vector<20x20xi32>
    %c2_i32 = arith.constant 2 : i32
    %35 = vector.broadcast %c2_i32 : i32 to vector<20x20xi32>
    %36 = arith.cmpi sge, %33, %35 : vector<20x20xi32>
    %c18_i32 = arith.constant 18 : i32
    %37 = vector.broadcast %c18_i32 : i32 to vector<20x20xi32>
    %38 = arith.cmpi slt, %33, %37 : vector<20x20xi32>
    %39 = arith.andi %36, %38 : vector<20x20xi1>
    %c2_i32_10 = arith.constant 2 : i32
    %40 = vector.broadcast %c2_i32_10 : i32 to vector<20x20xi32>
    %41 = arith.cmpi sge, %34, %40 : vector<20x20xi32>
    %42 = arith.andi %39, %41 : vector<20x20xi1>
    %c18_i32_11 = arith.constant 18 : i32
    %43 = vector.broadcast %c18_i32_11 : i32 to vector<20x20xi32>
    %44 = arith.cmpi slt, %34, %43 : vector<20x20xi32>
    %45 = arith.andi %42, %44 : vector<20x20xi1>
    %46 = arith.extui %45 : vector<20x20xi1> to vector<20x20xi32>
    %47 = arith.sitofp %46 : vector<20x20xi32> to vector<20x20xf32>
    %48 = vector.shape_cast %47 : vector<20x20xf32> to vector<1x1x20x20xf32>
    %49 = vector.broadcast %48 : vector<1x1x20x20xf32> to vector<2x2x20x20xf32>
    %50 = arith.mulf %32, %49 : vector<2x2x20x20xf32>
    %cst_12 = arith.constant dense<0.000000e+00> : vector<2x2x20xf32>
    %51 = vector.multi_reduction <add>, %50, %cst_12 [3] : vector<2x2x20x20xf32> to vector<2x2x20xf32>
    %52 = vector.shape_cast %51 : vector<2x2x20xf32> to vector<2x2x20x1xf32>
    %cst_13 = arith.constant dense<0.000000e+00> : vector<2x2x1xf32>
    %53 = vector.multi_reduction <add>, %52, %cst_13 [2] : vector<2x2x20x1xf32> to vector<2x2x1xf32>
    %54 = vector.shape_cast %53 : vector<2x2x1xf32> to vector<2x2x1x1xf32>
    %cst_14 = arith.constant 3.906250e-03 : f32
    %55 = vector.broadcast %cst_14 : f32 to vector<2x2x1x1xf32>
    %56 = arith.mulf %54, %55 : vector<2x2x1x1xf32>
    %57 = vector.shape_cast %56 : vector<2x2x1x1xf32> to vector<2x2x1x1x1xf32>
    %c0_15 = arith.constant 0 : index
    %c0_16 = arith.constant 0 : index
    %58 = arith.index_cast %7 : i32 to index
    %c0_17 = arith.constant 0 : index
    %59 = vector.load %arg3[%c0_15, %c0_16, %58, %c0_17] : memref<1x12x20x20xf32, #tpu.memory_space<vmem>>, vector<1x12x16x20xf32>
    %60 = vector.shape_cast %59 : vector<1x12x16x20xf32> to vector<12x16x20xf32>
    %61 = vector.extract_strided_slice %60 {offsets = [0, 0, 0], sizes = [12, 16, 16], strides = [1, 1, 1]} : vector<12x16x20xf32> to vector<12x16x16xf32>
    %c1_i32 = arith.constant 1 : i32
    %62 = arith.cmpi eq, %9, %c1_i32 : i32
    %63 = vector.extract_strided_slice %60 {offsets = [0, 0, 1], sizes = [12, 16, 16], strides = [1, 1, 1]} : vector<12x16x20xf32> to vector<12x16x16xf32>
    %64 = arith.select %62, %63, %61 : vector<12x16x16xf32>
    %c2_i32_18 = arith.constant 2 : i32
    %65 = arith.cmpi eq, %9, %c2_i32_18 : i32
    %66 = vector.extract_strided_slice %60 {offsets = [0, 0, 2], sizes = [12, 16, 16], strides = [1, 1, 1]} : vector<12x16x20xf32> to vector<12x16x16xf32>
    %67 = arith.select %65, %66, %64 : vector<12x16x16xf32>
    %c3_i32 = arith.constant 3 : i32
    %68 = arith.cmpi eq, %9, %c3_i32 : i32
    %69 = vector.extract_strided_slice %60 {offsets = [0, 0, 3], sizes = [12, 16, 16], strides = [1, 1, 1]} : vector<12x16x20xf32> to vector<12x16x16xf32>
    %70 = arith.select %68, %69, %67 : vector<12x16x16xf32>
    %c4_i32 = arith.constant 4 : i32
    %71 = arith.cmpi eq, %9, %c4_i32 : i32
    %72 = vector.extract_strided_slice %60 {offsets = [0, 0, 4], sizes = [12, 16, 16], strides = [1, 1, 1]} : vector<12x16x20xf32> to vector<12x16x16xf32>
    %73 = arith.select %71, %72, %70 : vector<12x16x16xf32>
    %74 = vector.shape_cast %73 : vector<12x16x16xf32> to vector<2x2x3x16x16xf32>
    %75 = vector.broadcast %1 : f32 to vector<2x2x3x16x16xf32>
    %76 = arith.mulf %74, %75 : vector<2x2x3x16x16xf32>
    %cst_19 = arith.constant 0.000000e+00 : f32
    %cst_20 = arith.constant 1.000000e+00 : f32
    %77 = vector.broadcast %cst_19 : f32 to vector<2x2x3x16x16xf32>
    %78 = arith.maximumf %77, %76 : vector<2x2x3x16x16xf32>
    %79 = vector.broadcast %cst_20 : f32 to vector<2x2x3x16x16xf32>
    %80 = arith.minimumf %79, %78 : vector<2x2x3x16x16xf32>
    %81 = vector.broadcast %3 : f32 to vector<2x2x3x16x16xf32>
    %82 = arith.mulf %81, %80 : vector<2x2x3x16x16xf32>
    %cst_21 = arith.constant 1.000000e+00 : f32
    %83 = arith.subf %cst_21, %3 : f32
    %84 = vector.broadcast %83 : f32 to vector<2x2x1x1x1xf32>
    %85 = arith.mulf %84, %57 : vector<2x2x1x1x1xf32>
    %86 = vector.broadcast %85 : vector<2x2x1x1x1xf32> to vector<2x2x3x16x16xf32>
    %87 = arith.addf %82, %86 : vector<2x2x3x16x16xf32>
    %cst_22 = arith.constant 0.000000e+00 : f32
    %cst_23 = arith.constant 1.000000e+00 : f32
    %88 = vector.broadcast %cst_22 : f32 to vector<2x2x3x16x16xf32>
    %89 = arith.maximumf %88, %87 : vector<2x2x3x16x16xf32>
    %90 = vector.broadcast %cst_23 : f32 to vector<2x2x3x16x16xf32>
    %91 = arith.minimumf %90, %89 : vector<2x2x3x16x16xf32>
    %92 = vector.extract_strided_slice %91 {offsets = [0, 0, 0, 0, 0], sizes = [2, 2, 1, 16, 16], strides = [1, 1, 1, 1, 1]} : vector<2x2x3x16x16xf32> to vector<2x2x1x16x16xf32>
    %93 = vector.shape_cast %92 : vector<2x2x1x16x16xf32> to vector<2x2x16x16xf32>
    %cst_24 = arith.constant 2.989000e-01 : f32
    %94 = vector.broadcast %cst_24 : f32 to vector<2x2x16x16xf32>
    %95 = arith.mulf %94, %93 : vector<2x2x16x16xf32>
    %96 = vector.extract_strided_slice %91 {offsets = [0, 0, 1, 0, 0], sizes = [2, 2, 1, 16, 16], strides = [1, 1, 1, 1, 1]} : vector<2x2x3x16x16xf32> to vector<2x2x1x16x16xf32>
    %97 = vector.shape_cast %96 : vector<2x2x1x16x16xf32> to vector<2x2x16x16xf32>
    %cst_25 = arith.constant 5.870000e-01 : f32
    %98 = vector.broadcast %cst_25 : f32 to vector<2x2x16x16xf32>
    %99 = arith.mulf %98, %97 : vector<2x2x16x16xf32>
    %100 = arith.addf %95, %99 : vector<2x2x16x16xf32>
    %101 = vector.extract_strided_slice %91 {offsets = [0, 0, 2, 0, 0], sizes = [2, 2, 1, 16, 16], strides = [1, 1, 1, 1, 1]} : vector<2x2x3x16x16xf32> to vector<2x2x1x16x16xf32>
    %102 = vector.shape_cast %101 : vector<2x2x1x16x16xf32> to vector<2x2x16x16xf32>
    %cst_26 = arith.constant 1.140000e-01 : f32
    %103 = vector.broadcast %cst_26 : f32 to vector<2x2x16x16xf32>
    %104 = arith.mulf %103, %102 : vector<2x2x16x16xf32>
    %105 = arith.addf %100, %104 : vector<2x2x16x16xf32>
    %106 = vector.shape_cast %105 : vector<2x2x16x16xf32> to vector<2x2x1x16x16xf32>
    %107 = vector.broadcast %5 : f32 to vector<2x2x3x16x16xf32>
    %108 = arith.mulf %107, %91 : vector<2x2x3x16x16xf32>
    %cst_27 = arith.constant 1.000000e+00 : f32
    %109 = arith.subf %cst_27, %5 : f32
    %110 = vector.broadcast %109 : f32 to vector<2x2x1x16x16xf32>
    %111 = arith.mulf %110, %106 : vector<2x2x1x16x16xf32>
    %112 = vector.broadcast %111 : vector<2x2x1x16x16xf32> to vector<2x2x3x16x16xf32>
    %113 = arith.addf %108, %112 : vector<2x2x3x16x16xf32>
    %cst_28 = arith.constant 0.000000e+00 : f32
    %cst_29 = arith.constant 1.000000e+00 : f32
    %114 = vector.broadcast %cst_28 : f32 to vector<2x2x3x16x16xf32>
    %115 = arith.maximumf %114, %113 : vector<2x2x3x16x16xf32>
    %116 = vector.broadcast %cst_29 : f32 to vector<2x2x3x16x16xf32>
    %117 = arith.minimumf %116, %115 : vector<2x2x3x16x16xf32>
    %118 = vector.shape_cast %117 : vector<2x2x3x16x16xf32> to vector<12x16x16xf32>
    %c0_30 = arith.constant 0 : index
    %c0_31 = arith.constant 0 : index
    %c0_32 = arith.constant 0 : index
    %c0_33 = arith.constant 0 : index
    %119 = vector.load %arg4[%c0_30, %c0_31, %c0_32, %c0_33] : memref<1x12x16x16xf32, #tpu.memory_space<vmem>>, vector<1x12x16x16xf32>
    %120 = vector.shape_cast %119 : vector<1x12x16x16xf32> to vector<12x16x16xf32>
    %121 = vector.shape_cast %118 : vector<12x16x16xf32> to vector<1x12x16x16xf32>
    tpu.vector_store %arg4[%c0_30, %c0_31, %c0_32, %c0_33], %121 {strides = array<i32>} : memref<1x12x16x16xf32, #tpu.memory_space<vmem>>, vector<1x12x16x16xf32>,
    return
  }
  func.func @transform_0(%arg0: i32) -> (i32, i32) {
    %c0_i32 = arith.constant 0 : i32
    %c0_i32_0 = arith.constant 0 : i32
    %c0_i32_1 = arith.constant 0 : i32
    return %c0_i32, %c0_i32_0 : i32, i32
  }
  func.func @transform_1(%arg0: i32) -> (i32, i32) {
    %c0_i32 = arith.constant 0 : i32
    %c0_i32_0 = arith.constant 0 : i32
    %c0_i32_1 = arith.constant 0 : i32
    return %c0_i32, %c0_i32_0 : i32, i32
  }
  func.func @transform_2(%arg0: i32) -> (i32, i32, i32, i32) {
    %c0_i32 = arith.constant 0 : i32
    %c0_i32_0 = arith.constant 0 : i32
    %c0_i32_1 = arith.constant 0 : i32
    %c0_i32_2 = arith.constant 0 : i32
    return %arg0, %c0_i32, %c0_i32_0, %c0_i32_1 : i32, i32, i32, i32
  }
  func.func @transform_3(%arg0: i32) -> (i32, i32, i32, i32) {
    %c0_i32 = arith.constant 0 : i32
    %c0_i32_0 = arith.constant 0 : i32
    %c0_i32_1 = arith.constant 0 : i32
    %c0_i32_2 = arith.constant 0 : i32
    return %arg0, %c0_i32, %c0_i32_0, %c0_i32_1 : i32, i32, i32, i32
  }
}

</mosaic_0001>

<bundles_post_ra>
// kernel: tpu_custom_call.1
= control target key start
LH: loop header
LB: loop body
LE: loop exit
PB: predicated region body
PF: predicated region fallthrough
CT: control target
= control target key end

     0   :  { %8 = vsyncpa [#allocation4], 0  ;;  %s2814_s0 = inlined_call_operand.vmem [shape: f32[2,3], index: 0, kind: input, shape index: {}]   ;;  %s2815_s1 = inlined_call_operand.vmem [shape: s32[2,2], index: 1, kind: input, shape index: {}]   ;;  %s2816_s2 = inlined_call_operand.vmem [shape: f32[2,12,20,20], index: 2, kind: input, shape index: {}]   ;;  %s2817_s3 = inlined_call_operand.hbm [shape: f32[2,12,16,16], index: 3, kind: output, shape index: {}]  }
   0x1   :  { %9 = vsyncpa [#allocation6], 0 }
   0x2   :  { %10 = vsyncpa [#allocation3], 0 }
   0x3   :  { %12 = vsyncpa [#allocation3 + $0x1], 0  ;;  %s1811_s12 = smov 0   ;;  %s1813_s13 = smov 0  }
   0x4   :  { %s1815_s14 = smov 0   ;;  %s1817_s15 = smov 0  }
   0x5 LB: > { %s1832_s16 = sadd.s32 4294967295, %s1782_s15   ;;  %s1594_s17 = sadd.s32 4294967294, %s1782_s15   ;;  %s1782_s15 = sphi %s1817_s15, %s2833_s15   ;;  %s1778_s14 = sphi %s1815_s14, %s2832_s14   ;;  %s1774_s13 = sphi %s1813_s13, %s2831_s13   ;;  %s1770_s12 = sphi %s1811_s12, %s2830_s12  }
   0x6   : > { %s1836_s18 = sadd.s32 1, %s1782_s15   ;;  %s93_s19 = sadd.s32 1, %s1778_s14 }
   0x7   : > { %s90_s20 = ssub.s32 %s1782_s15, %s1836_s18  ;;  %p103_p0 = scmp.ne.s32.totalorder %s1778_s14, %s1774_s13 }
   0x8   : > { %p91_p1 = scmp.eq.s32.totalorder %s90_s20, 0  ;;  %p104_p2 = scmp.eq.s32.totalorder %s1832_s16, 1 }
   0x9   : > { %p109_p3 = scmp.ne.s32.totalorder %s1774_s13, %s1770_s12  ;;  %p110_p4 = scmp.eq.s32.totalorder %s1594_s17, 1 }
   0xa   : > { %s1847_s21 = scalar_select %p91_p1, %s1778_s14, %s93_s19  }
   0xb   : > { %p1849_p5 = por %p104_p2, %p103_p0  ;;  %p1853_p6 = por %p110_p4, %p109_p3 }
   0xc   : > { %p1595_p7 = scmp.ge.s32.totalorder %s1782_s15, 1  ;;  %p117_p8 = scmp.lt.s32.totalorder %s1782_s15, 3 }
   0xd   : > { %p1634_p9 = scmp.eq.s32.totalorder %s1832_s16, 0  ;;  %s129_s26 = sshll.u32 %s2814_s0, 4  ;;  %s130_s26 = int_to_ptr.vmem [resolvable:$true] %s129_s26 }
   0xe   : > { %p118_p10 = pnand %p1595_p7, %p117_p8  ;;  %s139_s29 = sshll.u32 %s2815_s1, 4  ;;  %s140_s29 = int_to_ptr.vmem [resolvable:$true] %s139_s29 }
   0xf   : > { %s1784_s30 = smov [#allocation2]   ;;  %s1785_s4 = smov [#allocation5]  }
  0x10   : > { %p1623_p11 = pneg %p118_p10 }
  0x11   : > { %160 = sbr.rel (%p118_p10) target bundleno = 797 (0x31d), region = 32 }
  0x12   : > { %p1624_p12 = pnand %p1634_p9, %p1623_p11 }
  0x14   : > { %1626 = dma.vmem_to_smem (!%p1624_p12), %s130_s26, 32, %s1784_s30, [#allocation4]  }
  0x15   : > { %1629 = dma.vmem_to_smem (!%p1624_p12), %s140_s29, 32, %s1785_s4, [#allocation6]  }
  0x16   : > { %1757 = dma.done.wait (%p1634_p9), [#allocation4], 32  }
  0x17   : > { %1759 = vsyncadd (%p1634_p9), [#allocation4], 4294967264 }
  0x18   : > { %1761 = dma.done.wait (%p1634_p9), [#allocation6], 32  }
  0x19   : > { %1763 = vsyncadd (%p1634_p9), [#allocation6], 4294967264 }
  0x1a   : > { %172 = sfence }
  0x1b   : > { %p191_p13 = scmp.lt.s32.totalorder %s1832_s16, 1  ;;  %s1878_s5 = sshll.u32 %s1832_s16, 7  ;;  %v409_v0 = vlaneseq  ;;  %v1786_v14 = vmov 0.0   ;;  %vm450_vm7 = vcmask 162816   ;;  %vm457_vm9 = vcmask 158720  }
  0x1c   : > { %s197_s6 = sld [smem:[#allocation2 + %s1878_s5]]  ;;  %s1787_s20 = smov 1   ;;  %vm489_vm11 = vcmask 1043456  }
  0x1d   : > { %s192_s7 = scalar_select %p191_p13, %s1832_s16, 1  ;;  %v414_v1 = vand.u32 127, %v409_v0  ;;  %v410_v2 = vshrl.u32 %v409_v0, 7 }
  0x1e   : > { %s202_s17 = sld [smem:[#allocation5 + %s1878_s5]]  ;;  %s198_s24 = sadd.s32 1, %s1878_s5 }
  0x1f   : > { %s1611_s8 = smul.u32 288, %s192_s7  ;;  %vm424_vm0 = vcmp.ge.s32.totalorder %v414_v1, 2  ;;  %vm428_vm1 = vcmp.lt.s32.totalorder %v414_v1, 18  ;;  %v412_v3 = vadd.s32 16, %v410_v2  ;;  %vm415_vm4 = vcmp.ge.s32.totalorder %v410_v2, 2  ;;  %s2121_s25 = sld [smem:[#allocation2 + %s198_s24]] }
  0x20   : > { %vm430_vm2 = vmand %vm424_vm0, %vm428_vm1  ;;  %s2129_s26 = sld [smem:[#allocation5 + %s198_s24]]  ;;  %s188_s9 = sand.u32 1, %s1774_s13  }
  0x21   : > { %s1885_s11 = scalar_lea.vmem %s2816_s2, %s1611_s8  ;;  %vm420_vm3 = vcmp.lt.s32.totalorder %v412_v3, 18  ;;  %v1900_v15 = vsel %vm430_vm2, 1.0, %v1786_v14  ;;  %vm1916_vm8 = vmand %vm415_vm4, %vm424_vm0  ;;  %s1788_s8 = smov 124  }
  0x22   : > { %v214_v4 = vld [vmem:[%s1885_s11 + $0x50] sm:$0xff]  ;;  %v217_v5 = vld [vmem:[%s1885_s11 + $0x68] sm:$0xff]  ;;  %v220_v6 = vld [vmem:[%s1885_s11 + $0x80] sm:$0xff]  ;;  %v1892_v7 = vstv %s197_s6  ;;  %s200_s6 = sadd.s32 2, %s1878_s5  ;;  %s1610_s10 = smul.u32 192, %s188_s9 }
  0x23   : > { %v251_v8 = vmul.f32 %v1892_v7, %v214_v4  ;;  %v254_v9 = vmul.f32 %v1892_v7, %v217_v5  ;;  %v257_v10 = vmul.f32 %v1892_v7, %v220_v6  ;;  %v206_v11 = vld [vmem:[%s1885_s11 + $0x10] sm:$0xf]  ;;  %v209_v12 = vld [vmem:[%s1885_s11 + $0x28] sm:$0xf]  ;;  %v212_v13 = vld [vmem:[%s1885_s11 + $0x40] sm:$0xf] }
  0x24   : > { %v243_v16 = vmul.f32 %v1892_v7, %v206_v11  ;;  %v246_v17 = vmul.f32 %v1892_v7, %v209_v12  ;;  %v249_v18 = vmul.f32 %v1892_v7, %v212_v13  ;;  %vm427_vm5 = vmand %vm420_vm3, %vm424_vm0  ;;  %v204_v19 = vld [vmem:[%s1885_s11] sm:$0xff]  ;;  %v207_v20 = vld [vmem:[%s1885_s11 + $0x18] sm:$0xff]  ;;  %s2007_s19 = scalar_lea.vmem %s1885_s11, %s202_s17  ;;  %s2484_s7 = sld [smem:[#allocation2 + %s200_s6]]  ;;  %vm1468_vm0 = vcmask 130048  }
  0x25   : > { %v287_v21 = vmax.f32 %v251_v8, 0.0  ;;  %v290_v22 = vmax.f32 %v254_v9, 0.0  ;;  %v293_v23 = vmax.f32 %v257_v10, 0.0  ;;  %vm431_vm6 = vmand %vm427_vm5, %vm428_vm1  ;;  %v210_v24 = vld [vmem:[%s1885_s11 + $0x30] sm:$0xff]  ;;  %v241_v25 = vmul.f32 %v1892_v7, %v204_v19  ;;  %v215_v31 = vld [vmem:[%s1885_s11 + $0x58] sm:$0xf] }
  0x26   : > { %v279_v26 = vmax.f32 %v243_v16, 0.0  ;;  %v282_v27 = vmax.f32 %v246_v17, 0.0  ;;  %v285_v28 = vmax.f32 %v249_v18, 0.0  ;;  %v1912_v29 = vsel %vm431_vm6, 1.0, %v1786_v14  ;;  %v218_v36 = vld [vmem:[%s1885_s11 + $0x70] sm:$0xf]  ;;  %vm429_vm10 = vmand %vm1916_vm8, %vm428_vm1 }
  0x27   : > { %v323_v32 = vmin.f32 %v287_v21, 1.0  ;;  %v326_v33 = vmin.f32 %v290_v22, 1.0  ;;  %v329_v34 = vmin.f32 %v293_v23, 1.0  ;;  %v244_v35 = vmul.f32 %v1892_v7, %v207_v20  ;;  %v221_v41 = vld [vmem:[%s1885_s11 + $0x88] sm:$0xf]  ;;  %v216_v3 = vld [vmem:[%s1885_s11 + $0x60] sm:$0xff] }
  0x28   : > { %v315_v37 = vmin.f32 %v279_v26, 1.0  ;;  %v318_v38 = vmin.f32 %v282_v27, 1.0  ;;  %v321_v39 = vmin.f32 %v285_v28, 1.0  ;;  %v247_v40 = vmul.f32 %v1892_v7, %v210_v24  ;;  %v213_v2 = vld [vmem:[%s1885_s11 + $0x48] sm:$0xff]  ;;  %v219_v4 = vld [vmem:[%s1885_s11 + $0x78] sm:$0xff]  ;;  %v208_v20 = vld [vmem:[%s1885_s11 + $0x20] sm:$0xff] }
  0x29   : > { %v353_v42 = vmul.f32 0.2989, %v323_v32  ;;  %v365_v43 = vmul.f32 0.587, %v326_v33  ;;  %v389_v44 = vmul.f32 0.114, %v329_v34  ;;  %v252_v45 = vmul.f32 %v1892_v7, %v215_v31 }
  0x2a   : > { %v351_v46 = vmul.f32 0.2989, %v315_v37  ;;  %v363_v47 = vmul.f32 0.587, %v318_v38  ;;  %v387_v48 = vmul.f32 0.114, %v321_v39  ;;  %v255_v49 = vmul.f32 %v1892_v7, %v218_v36 }
  0x2b   : > { %v377_v50 = vadd.f32 %v365_v43, %v353_v42  ;;  %v277_v51 = vmax.f32 %v241_v25, 0.0  ;;  %v280_v52 = vmax.f32 %v244_v35, 0.0  ;;  %v283_v53 = vmax.f32 %v247_v40, 0.0  ;;  %v211_v21 = vld [vmem:[%s1885_s11 + $0x38] sm:$0xff]  ;;  %v224_v35 = vld [vmem:[%s1885_s11 + $0xa0] sm:$0xf] }
  0x2c   : > { %v375_v54 = vadd.f32 %v363_v47, %v351_v46  ;;  %v1930_v55 = vsel %vm429_vm10, 1.0, %v1786_v14  ;;  %v258_v56 = vmul.f32 %v1892_v7, %v221_v41  ;;  %v288_v57 = vmax.f32 %v252_v45, 0.0  ;;  %v205_v14 = vld [vmem:[%s1885_s11 + $0x8] sm:$0xff]  ;;  %v227_v40 = vld [vmem:[%s1885_s11 + $0xb8] sm:$0xf]  ;;  %s1147_s27 = ssub.f32 1.0, %s2121_s25 }
  0x2d   : > { %v401_v58 = vadd.f32 %v389_v44, %v377_v50  ;;  %v313_v59 = vmin.f32 %v277_v51, 1.0  ;;  %v316_v60 = vmin.f32 %v280_v52, 1.0  ;;  %v319_v61 = vmin.f32 %v283_v53, 1.0  ;;  %v230_v45 = vld [vmem:[%s1885_s11 + $0xd0] sm:$0xf]  ;;  %p554_p0 = scmp.eq.s32.totalorder %s2129_s26, 1 }
  0x2e   : > { %v399_v62 = vadd.f32 %v387_v48, %v375_v54  ;;  %v291_v63 = vmax.f32 %v255_v49, 0.0  ;;  %v294_v0 = vmax.f32 %v258_v56, 0.0  ;;  %v324_v1 = vmin.f32 %v288_v57, 1.0  ;;  %v223_v54 = vld [vmem:[%s1885_s11 + $0x98] sm:$0xff]  ;;  %p678_p1 = scmp.eq.s32.totalorder %s2129_s26, 2  ;;  %p802_p2 = scmp.eq.s32.totalorder %s2129_s26, 3 }
  0x2f   : > { %v442_v5 = vmul.f32 %v1900_v15, %v401_v58  ;;  %v349_v6 = vmul.f32 0.2989, %v313_v59  ;;  %v361_v8 = vmul.f32 0.587, %v316_v60  ;;  %v385_v9 = vmul.f32 0.114, %v319_v61 }
  0x30   : > { %v440_v10 = vmul.f32 %v1912_v29, %v399_v62  ;;  %v327_v11 = vmin.f32 %v291_v63, 1.0  ;;  %v330_v12 = vmin.f32 %v294_v0, 1.0  ;;  %v354_v13 = vmul.f32 0.2989, %v324_v1  ;;  %v226_v60 = vld [vmem:[%s1885_s11 + $0xb0] sm:$0xff]  ;;  %v229_v61 = vld [vmem:[%s1885_s11 + $0xc8] sm:$0xff] }
  0x31   : > { %v464_v16 = vsel %vm450_vm7, %v442_v5, 0.0  ;;  %v373_v17 = vadd.f32 %v361_v8, %v349_v6  ;;  %v250_v18 = vmul.f32 %v1892_v7, %v213_v2  ;;  %v253_v19 = vmul.f32 %v1892_v7, %v216_v3  ;;  %s555_s28 = scalar_select %p554_p0, 1, 0 }
  0x32   : > { %465 = vadd.xlane.f32.xlu2 %v464_v16  ;;  %v458_v22 = vsel %vm457_vm9, %v440_v10, 0.0  ;;  %v366_v23 = vmul.f32 0.587, %v327_v11  ;;  %v390_v24 = vmul.f32 0.114, %v330_v12  ;;  %v256_v25 = vmul.f32 %v1892_v7, %v219_v4  ;;  %p926_p3 = scmp.eq.s32.totalorder %s2129_s26, 4 }
  0x33   : > { %459 = vadd.xlane.f32.xlu1 %v458_v22  ;;  %v397_v26 = vadd.f32 %v385_v9, %v373_v17  ;;  %v286_v27 = vmax.f32 %v250_v18, 0.0  ;;  %v289_v28 = vmax.f32 %v253_v19, 0.0  ;;  %v242_v30 = vmul.f32 %v1892_v7, %v205_v14  ;;  %v228_v22 = vld [vmem:[%s1885_s11 + $0xc0] sm:$0xff]  ;;  %s679_s29 = scalar_select %p678_p1, 1, 0 }
  0x34   : > { %v378_v31 = vadd.f32 %v366_v23, %v354_v13  ;;  %v292_v32 = vmax.f32 %v256_v25, 0.0  ;;  %v245_v33 = vmul.f32 %v1892_v7, %v208_v20  ;;  %v248_v34 = vmul.f32 %v1892_v7, %v211_v21  ;;  %v222_v20 = vld [vmem:[%s1885_s11 + $0x90] sm:$0xff]  ;;  %v225_v21 = vld [vmem:[%s1885_s11 + $0xa8] sm:$0xff]  ;;  %s803_s30 = scalar_select %p802_p2, 1, 0 }
  0x35   : > { %v438_v36 = vmul.f32 %v1930_v55, %v397_v26  ;;  %v322_v37 = vmin.f32 %v286_v27, 1.0  ;;  %v325_v38 = vmin.f32 %v289_v28, 1.0  ;;  %v278_v39 = vmax.f32 %v242_v30, 0.0  ;;  %s927_s4 = scalar_select %p926_p3, 1, 0 }
  0x36   : > { %v402_v41 = vadd.f32 %v390_v24, %v378_v31  ;;  %v328_v42 = vmin.f32 %v292_v32, 1.0  ;;  %v281_v43 = vmax.f32 %v245_v33, 0.0  ;;  %v284_v44 = vmax.f32 %v248_v34, 0.0  ;;  %v233_v32 = vld [vmem:[%s1885_s11 + $0xe8] sm:$0xf]  ;;  %s1290_s5 = ssub.f32 1.0, %s2484_s7 }
  0x37   : > { %v451_v46 = vsel %vm450_vm7, %v438_v36, 0.0  ;;  %v352_v47 = vmul.f32 0.2989, %v322_v37  ;;  %v364_v48 = vmul.f32 0.587, %v325_v38  ;;  %v314_v49 = vmin.f32 %v278_v39, 1.0 }
  0x38   : > { %452 = vadd.xlane.f32.xlu0 %v451_v46  ;;  %v443_v50 = vmul.f32 %v1912_v29, %v402_v41  ;;  %v388_v51 = vmul.f32 0.114, %v328_v42  ;;  %v317_v52 = vmin.f32 %v281_v43, 1.0  ;;  %v320_v53 = vmin.f32 %v284_v44, 1.0  ;;  %v236_v37 = vld [vmem:[%s1885_s11 + $0x100] sm:$0xf] }
  0x39   : > { %v376_v56 = vadd.f32 %v364_v48, %v352_v47  ;;  %v350_v57 = vmul.f32 0.2989, %v314_v49  ;;  %v261_v58 = vmul.f32 %v1892_v7, %v224_v35  ;;  %v264_v59 = vmul.f32 %v1892_v7, %v227_v40  ;;  %v239_v38 = vld [vmem:[%s1885_s11 + $0x118] sm:$0xf]  ;;  %s1612_s17 = smul.u32 192, %s1832_s16  ;;  %s1494_s16 = scalar_lea.sflag [#allocation3], %s188_s9 }
  0x3a   : > { %v467_v62 = vsel %vm457_vm9, %v443_v50, 0.0  ;;  %v362_v63 = vmul.f32 0.587, %v317_v52  ;;  %v386_v0 = vmul.f32 0.114, %v320_v53  ;;  %v267_v1 = vmul.f32 %v1892_v7, %v230_v45 }
  0x3b   : > { %468 = vadd.xlane.f32.xlu2 %v467_v62  ;;  %v400_v2 = vadd.f32 %v388_v51, %v376_v56  ;;  %v297_v3 = vmax.f32 %v261_v58, 0.0  ;;  %v300_v4 = vmax.f32 %v264_v59, 0.0  ;;  %v260_v5 = vmul.f32 %v1892_v7, %v223_v54  ;;  %v238_v62 = vld [vmem:[%s1885_s11 + $0x110] sm:$0xff]  ;;  %s1505_s24 = scalar_lea.hbm %s2817_s3, %s1612_s17 }
  0x3c   : > { %v374_v6 = vadd.f32 %v362_v63, %v350_v57  ;;  %v303_v8 = vmax.f32 %v267_v1, 0.0  ;;  %v263_v9 = vmul.f32 %v1892_v7, %v226_v60  ;;  %v266_v10 = vmul.f32 %v1892_v7, %v229_v61  ;;  %v232_v60 = vld [vmem:[%s1885_s11 + $0xe0] sm:$0xff]  ;;  %v235_v61 = vld [vmem:[%s1885_s11 + $0xf8] sm:$0xff]  ;;  %s1508_s26 = sshll.u32 %s1505_s24, 4  ;;  %s1509_s26 = int_to_ptr.hbm [resolvable:$true] %s1508_s26 }
  0x3d   : > { %v441_v11 = vmul.f32 %v1930_v55, %v400_v2  ;;  %v333_v12 = vmin.f32 %v297_v3, 1.0  ;;  %v336_v13 = vmin.f32 %v300_v4, 1.0  ;;  %v296_v14 = vmax.f32 %v260_v5, 0.0 }
  0x3e   : > { %v398_v16 = vadd.f32 %v386_v0, %v374_v6  ;;  %v339_v17 = vmin.f32 %v303_v8, 1.0  ;;  %v299_v18 = vmax.f32 %v263_v9, 0.0  ;;  %v302_v19 = vmax.f32 %v266_v10, 0.0  ;;  %v231_v8 = vld [vmem:[%s1885_s11 + $0xd8] sm:$0xff] }
  0x3f   : > { %v461_v23 = vsel %vm450_vm7, %v441_v11, 0.0  ;;  %v357_v24 = vmul.f32 0.2989, %v333_v12  ;;  %v369_v25 = vmul.f32 0.587, %v336_v13  ;;  %v332_v26 = vmin.f32 %v296_v14, 1.0 }
  0x40   : > { %462 = vadd.xlane.f32.xlu1 %v461_v23  ;;  %v439_v27 = vmul.f32 %v1900_v15, %v398_v16  ;;  %v393_v28 = vmul.f32 0.114, %v339_v17  ;;  %v335_v30 = vmin.f32 %v299_v18, 1.0  ;;  %v338_v31 = vmin.f32 %v302_v19, 1.0  ;;  %v234_v13 = vld [vmem:[%s1885_s11 + $0xf0] sm:$0xff]  ;;  %v237_v14 = vld [vmem:[%s1885_s11 + $0x108] sm:$0xff] }
  0x41   : > { %v381_v33 = vadd.f32 %v369_v25, %v357_v24  ;;  %v356_v34 = vmul.f32 0.2989, %v332_v26  ;;  %v259_v35 = vmul.f32 %v1892_v7, %v222_v20  ;;  %v262_v36 = vmul.f32 %v1892_v7, %v225_v21  ;;  %s2730_s11 = scalar_lea.vmem [#allocation7], %s1610_s10 }
  0x42   : > { %v454_v39 = vsel %vm450_vm7, %v439_v27, 0.0  ;;  %v368_v40 = vmul.f32 0.587, %v335_v30  ;;  %v392_v41 = vmul.f32 0.114, %v338_v31  ;;  %v265_v42 = vmul.f32 %v1892_v7, %v228_v22 }
  0x43   : > { %455 = vadd.xlane.f32.xlu0 %v454_v39  ;;  %v405_v43 = vadd.f32 %v393_v28, %v381_v33  ;;  %v295_v44 = vmax.f32 %v259_v35, 0.0  ;;  %v298_v45 = vmax.f32 %v262_v36, 0.0  ;;  %v270_v46 = vmul.f32 %v1892_v7, %v233_v32 }
  0x44   : > { %v380_v47 = vadd.f32 %v368_v40, %v356_v34  ;;  %v301_v48 = vmax.f32 %v265_v42, 0.0  ;;  %v273_v49 = vmul.f32 %v1892_v7, %v236_v37  ;;  %v276_v50 = vmul.f32 %v1892_v7, %v239_v38 }
  0x45   : > { %v446_v51 = vmul.f32 %v1912_v29, %v405_v43  ;;  %v331_v52 = vmin.f32 %v295_v44, 1.0  ;;  %v334_v53 = vmin.f32 %v298_v45, 1.0  ;;  %v306_v54 = vmax.f32 %v270_v46, 0.0 }
  0x46   : > { %v404_v56 = vadd.f32 %v392_v41, %v380_v47  ;;  %v337_v57 = vmin.f32 %v301_v48, 1.0  ;;  %v309_v58 = vmax.f32 %v273_v49, 0.0  ;;  %v312_v59 = vmax.f32 %v276_v50, 0.0 }
  0x47   : > { %v476_v63 = vsel %vm457_vm9, %v446_v51, 0.0  ;;  %v355_v0 = vmul.f32 0.2989, %v331_v52  ;;  %v367_v1 = vmul.f32 0.587, %v334_v53  ;;  %v342_v2 = vmin.f32 %v306_v54, 1.0 }
  0x48   : > { %477 = vadd.xlane.f32.xlu2 %v476_v63  ;;  %v445_v3 = vmul.f32 %v1900_v15, %v404_v56  ;;  %v391_v4 = vmul.f32 0.114, %v337_v57  ;;  %v345_v5 = vmin.f32 %v309_v58, 1.0  ;;  %v348_v6 = vmin.f32 %v312_v59, 1.0  ;;  %v2018_v57 = vld [vmem:[%s2007_s19 + $0x8] sm:$0xff]  ;;  %v2023_v58 = vld [vmem:[%s2007_s19 + $0x30] sm:$0xff] }
  0x49   : > { %v379_v9 = vadd.f32 %v367_v1, %v355_v0  ;;  %v360_v10 = vmul.f32 0.2989, %v342_v2  ;;  %v269_v11 = vmul.f32 %v1892_v7, %v232_v60  ;;  %v272_v12 = vmul.f32 %v1892_v7, %v235_v61  ;;  %v2030_v59 = vld [vmem:[%s2007_s19 + $0x20] sm:$0xff]  ;;  %v2033_v60 = vld [vmem:[%s2007_s19 + $0x38] sm:$0xff]  ;;  %v2038_v61 = vld [vmem:[%s2007_s19 + $0x50] sm:$0xff] }
  0x4a   : > { %v473_v16 = vsel %vm450_vm7, %v445_v3, 0.0  ;;  %v372_v17 = vmul.f32 0.587, %v345_v5  ;;  %v396_v18 = vmul.f32 0.114, %v348_v6  ;;  %v275_v19 = vmul.f32 %v1892_v7, %v238_v62  ;;  %v2045_v62 = vld [vmem:[%s2007_s19 + $0x48] sm:$0xff] }
  0x4b   : > { %474 = vadd.xlane.f32.xlu1 %v473_v16  ;;  %v403_v20 = vadd.f32 %v391_v4, %v379_v9  ;;  %v305_v21 = vmax.f32 %v269_v11, 0.0  ;;  %v308_v22 = vmax.f32 %v272_v12, 0.0  ;;  %v268_v23 = vmul.f32 %v1892_v7, %v231_v8  ;;  %v2048_v63 = vld [vmem:[%s2007_s19 + $0x60] sm:$0xff]  ;;  %v2053_v0 = vld [vmem:[%s2007_s19 + $0x78] sm:$0xff]  ;;  %v2060_v1 = vld [vmem:[%s2007_s19 + $0x68] sm:$0xff] }
  0x4c   : > { %v384_v24 = vadd.f32 %v372_v17, %v360_v10  ;;  %v311_v25 = vmax.f32 %v275_v19, 0.0  ;;  %v271_v26 = vmul.f32 %v1892_v7, %v234_v13  ;;  %v274_v27 = vmul.f32 %v1892_v7, %v237_v14  ;;  %v2063_v2 = vld [vmem:[%s2007_s19 + $0x80] sm:$0xff]  ;;  %v2068_v3 = vld [vmem:[%s2007_s19 + $0x98] sm:$0xff]  ;;  %v2075_v4 = vld [vmem:[%s2007_s19 + $0x90] sm:$0xff] }
  0x4d   : > { %v444_v28 = vmul.f32 %v1930_v55, %v403_v20  ;;  %v341_v30 = vmin.f32 %v305_v21, 1.0  ;;  %v344_v31 = vmin.f32 %v308_v22, 1.0  ;;  %v304_v32 = vmax.f32 %v268_v23, 0.0  ;;  %v2078_v5 = vld [vmem:[%s2007_s19 + $0xa8] sm:$0xff]  ;;  %v2085_v6 = vld [vmem:[%s2007_s19 + $0xb0] sm:$0xff]  ;;  %v2095_v9 = vld [vmem:[%s2007_s19 + $0xd8] sm:$0xff] }
  0x4e   : > { %v408_v33 = vadd.f32 %v396_v18, %v384_v24  ;;  %v347_v34 = vmin.f32 %v311_v25, 1.0  ;;  %v307_v35 = vmax.f32 %v271_v26, 0.0  ;;  %v310_v36 = vmax.f32 %v274_v27, 0.0  ;;  %v2088_v8 = vld [vmem:[%s2007_s19 + $0xc8] sm:$0xff]  ;;  %v2098_v10 = vld [vmem:[%s2007_s19 + $0xf0] sm:$0xff]  ;;  %v2105_v11 = vld [vmem:[%s2007_s19 + $0xf8] sm:$0xff] }
  0x4f   : > { %v470_v37 = vsel %vm450_vm7, %v444_v28, 0.0  ;;  %v359_v38 = vmul.f32 0.2989, %v341_v30  ;;  %v371_v39 = vmul.f32 0.587, %v344_v31  ;;  %v340_v40 = vmin.f32 %v304_v32, 1.0 }
  0x50   : > { %471 = vadd.xlane.f32.xlu0 %v470_v37  ;;  %v449_v41 = vmul.f32 %v1912_v29, %v408_v33  ;;  %v395_v42 = vmul.f32 0.114, %v347_v34  ;;  %v343_v43 = vmin.f32 %v307_v35, 1.0  ;;  %v346_v44 = vmin.f32 %v310_v36, 1.0  ;;  %v2108_v12 = vld [vmem:[%s2007_s19 + $0x110] sm:$0xff]  ;;  %v2115_v17 = vld [vmem:[%s2007_s19 + $0xc0] sm:$0xff] }
  0x51   : > { %v383_v45 = vadd.f32 %v371_v39, %v359_v38  ;;  %v358_v46 = vmul.f32 0.2989, %v340_v40  ;;  %v2124_v25 = vld [vmem:[%s2007_s19 + $0xe0] sm:$0xff]  ;;  %v2133_v37 = vld [vmem:[%s2007_s19 + $0x108] sm:$0xff] }
  0x52   : > { %v485_v47 = vsel %vm457_vm9, %v449_v41, 0.0  ;;  %v370_v48 = vmul.f32 0.587, %v343_v43  ;;  %v394_v49 = vmul.f32 0.114, %v346_v44 }
  0x53   : > { %486 = vadd.xlane.f32.xlu2 %v485_v47  ;;  %v407_v50 = vadd.f32 %v395_v42, %v383_v45  ;;  %v1148_v42 = vstv %s1147_s27  ;;  %s1726_s27 = sshra.s32 %s1509_s26, 4  ;;  %s1727_s27 = int_to_ptr.hbm [resolvable:$true] %s1726_s27 }
  0x54   : > { %v382_v51 = vadd.f32 %v370_v48, %v358_v46  ;;  %p1733_p9 = scmp.lt.s32.totalorder %s1727_s27, %s2817_s3 }
  0x55   : > { %v448_v52 = vmul.f32 %v1900_v15, %v407_v50  ;;  %v2010_v15 = vld [vmem:[%s2007_s19 + $0x18] sm:$0xff] }
  0x56   : > { %v406_v53 = vadd.f32 %v394_v49, %v382_v51 }
  0x57   : > { %v482_v54 = vsel %vm450_vm7, %v448_v52, 0.0 }
  0x58   : > { %483 = vadd.xlane.f32.xlu1 %v482_v54  ;;  %v447_v29 = vmul.f32 %v1930_v55, %v406_v53  ;;  %v2015_v55 = vld [vmem:[%s2007_s19] sm:$0xff] }
  0x5a   : > { %v479_v56 = vsel %vm450_vm7, %v447_v29, 0.0  ;;  %v556_v29 = vstv %s555_s28  ;;  %s1728_s28 = scalar_lea.hbm %s1727_s27, 192 }
  0x5b   : > { %480 = vadd.xlane.f32.xlu0 %v479_v56  ;;  %vm2144_vm12 = vcmp.eq.s32.totalorder %v556_v29, 1  ;;  %p1729_p4 = scmp.ne.s32.totalorder %s1727_s27, %s1728_s28 }
  0x5d   : > { %p1730_p7 = pnand %p1729_p4, %p1849_p5 }
  0x5f   : > { %p1731_p8 = pneg %p1730_p7 }
  0x6b   : > { %586 = vrot.lane.b32.xlu2 %v2010_v15, %s1787_s20 }
  0x6f   : > { %582 = vrot.lane.b32.xlu0 %v2015_v55, %s1787_s20 }
  0x71   : > { %584 = vrot.lane.b32.xlu1 %v2018_v57, %s1787_s20 }
  0x73   : > { %590 = vrot.lane.b32.xlu2 %v2023_v58, %s1787_s20 }
  0x77   : > { %588 = vrot.lane.b32.xlu0 %v2030_v59, %s1787_s20 }
  0x79   : > { %592 = vrot.lane.b32.xlu1 %v2033_v60, %s1787_s20 }
  0x7b   : > { %596 = vrot.lane.b32.xlu2 %v2038_v61, %s1787_s20 }
  0x7f   : > { %594 = vrot.lane.b32.xlu0 %v2045_v62, %s1787_s20 }
  0x81   : > { %598 = vrot.lane.b32.xlu1 %v2048_v63, %s1787_s20 }
  0x83   : > { %602 = vrot.lane.b32.xlu2 %v2053_v0, %s1787_s20 }
  0x87   : > { %600 = vrot.lane.b32.xlu0 %v2060_v1, %s1787_s20 }
  0x89   : > { %604 = vrot.lane.b32.xlu1 %v2063_v2, %s1787_s20 }
  0x8b   : > { %608 = vrot.lane.b32.xlu2 %v2068_v3, %s1787_s20 }
  0x8f   : > { %606 = vrot.lane.b32.xlu0 %v2075_v4, %s1787_s20 }
  0x91   : > { %610 = vrot.lane.b32.xlu1 %v2078_v5, %s1787_s20 }
  0x93   : > { %614 = vrot.lane.b32.xlu2 %v2115_v17, %s1787_s20 }
  0x97   : > { %612 = vrot.lane.b32.xlu0 %v2085_v6, %s1787_s20 }
  0x99   : > { %616 = vrot.lane.b32.xlu1 %v2088_v8, %s1787_s20 }
  0x9b   : > { %620 = vrot.lane.b32.xlu2 %v2124_v25, %s1787_s20 }
  0x9f   : > { %618 = vrot.lane.b32.xlu0 %v2095_v9, %s1787_s20 }
  0xa1   : > { %622 = vrot.lane.b32.xlu1 %v2098_v10, %s1787_s20 }
  0xa3   : > { %626 = vrot.lane.b32.xlu2 %v2133_v37, %s1787_s20 }
  0xa5   : > { %v466_v13 = vpop.xlane.xlu2 %465 }
  0xa6   : > { %v460_v14 = vpop.xlane.xlu1 %459 }
  0xa7   : > { %624 = vrot.lane.b32.xlu0 %v2105_v11, %s1787_s20  ;;  %v490_v26 = vsel %vm489_vm11, %v460_v14, 0.0 }
  0xa9   : > { %628 = vrot.lane.b32.xlu1 %v2108_v12, %s1787_s20 }
  0xab   : > { %v453_v16 = vpop.xlane.xlu0 %452 }
  0xae   : > { %v469_v18 = vpop.xlane.xlu2 %468 }
  0xaf   : > { %v499_v19 = vsel %vm489_vm11, %v469_v18, 0.0 }
  0xb3   : > { %v463_v20 = vpop.xlane.xlu1 %462 }
  0xb4   : > { %v498_v21 = vadd.f32 %v466_v13, %v463_v20 }
  0xb6   : > { %v500_v22 = vadd.f32 %v499_v19, %v498_v21  ;;  %v456_v23 = vpop.xlane.xlu0 %455 }
  0xb7   : > { %v488_v24 = vadd.f32 %v456_v23, %v453_v16 }
  0xb8   : > { %v501_v27 = vrot.slane %v500_v22, 4 }
  0xb9   : > { %v491_v28 = vadd.f32 %v490_v26, %v488_v24 }
  0xba   : > { %v502_v30 = vadd.f32 %v501_v27, %v500_v22 }
  0xbb   : > { %v492_v31 = vrot.slane %v491_v28, 4  ;;  %v478_v33 = vpop.xlane.xlu2 %477 }
  0xbc   : > { %v503_v32 = vrot.slane %v502_v30, 2  ;;  %v508_v44 = vsel %vm489_vm11, %v478_v33, 0.0 }
  0xbd   : > { %v493_v34 = vadd.f32 %v492_v31, %v491_v28 }
  0xbe   : > { %v504_v35 = vadd.f32 %v503_v32, %v502_v30  ;;  %v475_v40 = vpop.xlane.xlu1 %474 }
  0xbf   : > { %v494_v36 = vrot.slane %v493_v34, 2 }
  0xc0   : > { %v505_v38 = vrot.slane %v504_v35, 1 }
  0xc1   : > { %v495_v39 = vadd.f32 %v494_v36, %v493_v34 }
  0xc2   : > { %v506_v41 = vadd.f32 %v505_v38, %v504_v35 }
  0xc3   : > { %v496_v43 = vrot.slane %v495_v39, 1  ;;  %v472_v45 = vpop.xlane.xlu0 %471 }
  0xc4   : > { %v526_v46 = vmul.f32 0.00390625, %v506_v41  ;;  %v507_v47 = vadd.f32 %v475_v40, %v472_v45 }
  0xc5   : > { %v497_v48 = vadd.f32 %v496_v43, %v495_v39 }
  0xc6   : > { %v2139_v49 = vmul.f32 %v1148_v42, %v526_v46  ;;  %v509_v50 = vadd.f32 %v508_v44, %v507_v47  ;;  %v487_v51 = vpop.xlane.xlu2 %486 }
  0xc7   : > { %v525_v52 = vmul.f32 0.00390625, %v497_v48  ;;  %v517_v53 = vsel %vm489_vm11, %v487_v51, 0.0 }
  0xc8   : > { %v510_v54 = vrot.slane %v509_v50, 4 }
  0xc9   : > { %v2142_v56 = vmul.f32 %v1148_v42, %v525_v52 }
  0xca   : > { %v511_v13 = vadd.f32 %v510_v54, %v509_v50 }
  0xcb   : > { %v484_v18 = vpop.xlane.xlu1 %483 }
  0xcc   : > { %v512_v16 = vrot.slane %v511_v13, 2 }
  0xce   : > { %v513_v19 = vadd.f32 %v512_v16, %v511_v13  ;;  %v481_v20 = vpop.xlane.xlu0 %480  ;;  %v587_v21 = vpop.permute.xlu2 %586 }
  0xcf   : > { %v516_v22 = vadd.f32 %v484_v18, %v481_v20  ;;  %v656_v23 = vsel %vm2144_vm12, %v2010_v15, %v587_v21 }
  0xd0   : > { %v514_v24 = vrot.slane %v513_v19, 1  ;;  %710 = vrot.lane.b32.xlu1 %v656_v23, %s1787_s20 }
  0xd1   : > { %v518_v26 = vadd.f32 %v517_v53, %v516_v22 }
  0xd2   : > { %v515_v27 = vadd.f32 %v514_v24, %v513_v19 }
  0xd3   : > { %v519_v28 = vrot.slane %v518_v26, 4 }
  0xd4   : > { %v527_v30 = vmul.f32 0.00390625, %v515_v27 }
  0xd5   : > { %v520_v31 = vadd.f32 %v519_v28, %v518_v26 }
  0xd6   : > { %v2152_v32 = vmul.f32 %v1148_v42, %v527_v30  ;;  %v591_v41 = vpop.permute.xlu2 %590 }
  0xd7   : > { %v521_v33 = vrot.slane %v520_v31, 2  ;;  %v658_v47 = vsel %vm2144_vm12, %v2023_v58, %v591_v41 }
  0xd9   : > { %v522_v34 = vadd.f32 %v521_v33, %v520_v31 }
  0xdb   : > { %v523_v35 = vrot.slane %v522_v34, 1 }
  0xdd   : > { %v524_v36 = vadd.f32 %v523_v35, %v522_v34 }
  0xde   : > { %v597_v50 = vpop.permute.xlu2 %596 }
  0xdf   : > { %v528_v38 = vmul.f32 0.00390625, %v524_v36  ;;  %v661_v54 = vsel %vm2144_vm12, %v2038_v61, %v597_v50 }
  0xe1   : > { %v2154_v39 = vmul.f32 %v1148_v42, %v528_v38  ;;  %v583_v40 = vpop.permute.xlu0 %582 }
  0xe2   : > { %v654_v43 = vsel %vm2144_vm12, %v2015_v55, %v583_v40 }
  0xe3   : > { %706 = vrot.lane.b32.xlu0 %v654_v43, %s1787_s20  ;;  %v585_v44 = vpop.permute.xlu1 %584 }
  0xe4   : > { %v655_v45 = vsel %vm2144_vm12, %v2018_v57, %v585_v44 }
  0xe5   : > { %708 = vrot.lane.b32.xlu2 %v655_v45, %s1787_s20 }
  0xe6   : > { %v603_v16 = vpop.permute.xlu2 %602 }
  0xe7   : > { %v664_v20 = vsel %vm2144_vm12, %v2053_v0, %v603_v16 }
  0xe9   : > { %v589_v46 = vpop.permute.xlu0 %588 }
  0xea   : > { %v657_v42 = vsel %vm2144_vm12, %v2030_v59, %v589_v46 }
  0xeb   : > { %712 = vrot.lane.b32.xlu0 %v657_v42, %s1787_s20  ;;  %v593_v48 = vpop.permute.xlu1 %592 }
  0xec   : > { %v659_v51 = vsel %vm2144_vm12, %v2033_v60, %v593_v48 }
  0xed   : > { %714 = vrot.lane.b32.xlu2 %v658_v47, %s1787_s20  ;;  %716 = vrot.lane.b32.xlu1 %v659_v51, %s1787_s20 }
  0xee   : > { %v609_v23 = vpop.permute.xlu2 %608 }
  0xef   : > { %v667_v27 = vsel %vm2144_vm12, %v2068_v3, %v609_v23 }
  0xf1   : > { %v595_v52 = vpop.permute.xlu0 %594 }
  0xf2   : > { %v660_v53 = vsel %vm2144_vm12, %v2045_v62, %v595_v52 }
  0xf3   : > { %718 = vrot.lane.b32.xlu0 %v660_v53, %s1787_s20  ;;  %v599_v29 = vpop.permute.xlu1 %598  ;;  %v680_v53 = vstv %s679_s29 }
  0xf4   : > { %v662_v13 = vsel %vm2144_vm12, %v2048_v63, %v599_v29  ;;  %vm2249_vm13 = vcmp.eq.s32.totalorder %v680_v53, 1 }
  0xf5   : > { %720 = vrot.lane.b32.xlu2 %v661_v54, %s1787_s20  ;;  %722 = vrot.lane.b32.xlu1 %v662_v13, %s1787_s20 }
  0xf6   : > { %v615_v34 = vpop.permute.xlu2 %614 }
  0xf7   : > { %v670_v36 = vsel %vm2144_vm12, %v2115_v17, %v615_v34 }
  0xf9   : > { %v601_v18 = vpop.permute.xlu0 %600 }
  0xfa   : > { %v663_v19 = vsel %vm2144_vm12, %v2060_v1, %v601_v18 }
  0xfb   : > { %724 = vrot.lane.b32.xlu0 %v663_v19, %s1787_s20  ;;  %v605_v21 = vpop.permute.xlu1 %604 }
  0xfc   : > { %v665_v22 = vsel %vm2144_vm12, %v2063_v2, %v605_v21 }
  0xfd   : > { %726 = vrot.lane.b32.xlu2 %v664_v20, %s1787_s20  ;;  %728 = vrot.lane.b32.xlu1 %v665_v22, %s1787_s20 }
  0xfe   : > { %v621_v43 = vpop.permute.xlu2 %620 }
  0xff   : > { %v673_v45 = vsel %vm2144_vm12, %v2124_v25, %v621_v43 }
 0x101   : > { %v607_v24 = vpop.permute.xlu0 %606 }
 0x102   : > { %v666_v26 = vsel %vm2144_vm12, %v2075_v4, %v607_v24 }
 0x103   : > { %730 = vrot.lane.b32.xlu0 %v666_v26, %s1787_s20  ;;  %v611_v28 = vpop.permute.xlu1 %610 }
 0x104   : > { %v668_v30 = vsel %vm2144_vm12, %v2078_v5, %v611_v28 }
 0x105   : > { %732 = vrot.lane.b32.xlu2 %v667_v27, %s1787_s20  ;;  %734 = vrot.lane.b32.xlu1 %v668_v30, %s1787_s20 }
 0x106   : > { %v627_v48 = vpop.permute.xlu2 %626 }
 0x107   : > { %v676_v51 = vsel %vm2144_vm12, %v2133_v37, %v627_v48 }
 0x109   : > { %v613_v31 = vpop.permute.xlu0 %612 }
 0x10a   : > { %v669_v33 = vsel %vm2144_vm12, %v2085_v6, %v613_v31 }
 0x10b   : > { %736 = vrot.lane.b32.xlu0 %v669_v33, %s1787_s20  ;;  %v617_v35 = vpop.permute.xlu1 %616 }
 0x10c   : > { %v671_v38 = vsel %vm2144_vm12, %v2088_v8, %v617_v35 }
 0x10d   : > { %740 = vrot.lane.b32.xlu1 %v671_v38, %s1787_s20  ;;  %738 = vrot.lane.b32.xlu2 %v670_v36, %s1787_s20 }
 0x111   : > { %v619_v40 = vpop.permute.xlu0 %618 }
 0x112   : > { %v672_v41 = vsel %vm2144_vm12, %v2095_v9, %v619_v40 }
 0x113   : > { %742 = vrot.lane.b32.xlu0 %v672_v41, %s1787_s20  ;;  %v623_v44 = vpop.permute.xlu1 %622 }
 0x114   : > { %v674_v46 = vsel %vm2144_vm12, %v2098_v10, %v623_v44 }
 0x115   : > { %746 = vrot.lane.b32.xlu1 %v674_v46, %s1787_s20  ;;  %744 = vrot.lane.b32.xlu2 %v673_v45, %s1787_s20 }
 0x119   : > { %v625_v42 = vpop.permute.xlu0 %624 }
 0x11a   : > { %v675_v47 = vsel %vm2144_vm12, %v2105_v11, %v625_v42 }
 0x11b   : > { %748 = vrot.lane.b32.xlu0 %v675_v47, %s1787_s20  ;;  %v629_v50 = vpop.permute.xlu1 %628 }
 0x11c   : > { %v677_v52 = vsel %vm2144_vm12, %v2108_v12, %v629_v50 }
 0x11d   : > { %752 = vrot.lane.b32.xlu1 %v677_v52, %s1787_s20  ;;  %750 = vrot.lane.b32.xlu2 %v676_v51, %s1787_s20 }
 0x13f   : > { %v709_v29 = vpop.permute.xlu2 %708 }
 0x140   : > { %v779_v13 = vsel %vm2249_vm13, %v2018_v57, %v709_v29 }
 0x141   : > { %832 = vrot.lane.b32.xlu2 %v779_v13, %s1787_s20 }
 0x142   : > { %v711_v14 = vpop.permute.xlu1 %710 }
 0x143   : > { %v780_v16 = vsel %vm2249_vm13, %v2010_v15, %v711_v14 }
 0x144   : > { %834 = vrot.lane.b32.xlu1 %v780_v16, %s1787_s20 }
 0x147   : > { %v715_v18 = vpop.permute.xlu2 %714 }
 0x148   : > { %v782_v19 = vsel %vm2249_vm13, %v2023_v58, %v715_v18 }
 0x149   : > { %838 = vrot.lane.b32.xlu2 %v782_v19, %s1787_s20 }
 0x14f   : > { %v721_v20 = vpop.permute.xlu2 %720 }
 0x150   : > { %v785_v21 = vsel %vm2249_vm13, %v2038_v61, %v721_v20 }
 0x151   : > { %844 = vrot.lane.b32.xlu2 %v785_v21, %s1787_s20 }
 0x155   : > { %v707_v22 = vpop.permute.xlu0 %706 }
 0x156   : > { %v778_v23 = vsel %vm2249_vm13, %v2015_v55, %v707_v22 }
 0x157   : > { %830 = vrot.lane.b32.xlu0 %v778_v23, %s1787_s20  ;;  %v727_v24 = vpop.permute.xlu2 %726 }
 0x158   : > { %v788_v26 = vsel %vm2249_vm13, %v2053_v0, %v727_v24 }
 0x159   : > { %850 = vrot.lane.b32.xlu2 %v788_v26, %s1787_s20 }
 0x15d   : > { %v713_v27 = vpop.permute.xlu0 %712 }
 0x15e   : > { %v781_v28 = vsel %vm2249_vm13, %v2030_v59, %v713_v27 }
 0x15f   : > { %836 = vrot.lane.b32.xlu0 %v781_v28, %s1787_s20  ;;  %v733_v30 = vpop.permute.xlu2 %732  ;;  %v717_v31 = vpop.permute.xlu1 %716 }
 0x160   : > { %v791_v33 = vsel %vm2249_vm13, %v2068_v3, %v733_v30  ;;  %v783_v34 = vsel %vm2249_vm13, %v2033_v60, %v717_v31  ;;  %v804_v30 = vstv %s803_s30 }
 0x161   : > { %856 = vrot.lane.b32.xlu2 %v791_v33, %s1787_s20  ;;  %840 = vrot.lane.b32.xlu1 %v783_v34, %s1787_s20  ;;  %vm2350_vm14 = vcmp.eq.s32.totalorder %v804_v30, 1 }
 0x165   : > { %v719_v35 = vpop.permute.xlu0 %718 }
 0x166   : > { %v784_v36 = vsel %vm2249_vm13, %v2045_v62, %v719_v35 }
 0x167   : > { %842 = vrot.lane.b32.xlu0 %v784_v36, %s1787_s20  ;;  %v723_v38 = vpop.permute.xlu1 %722  ;;  %v739_v40 = vpop.permute.xlu2 %738 }
 0x168   : > { %v786_v41 = vsel %vm2249_vm13, %v2048_v63, %v723_v38  ;;  %v794_v43 = vsel %vm2249_vm13, %v2115_v17, %v739_v40 }
 0x169   : > { %846 = vrot.lane.b32.xlu1 %v786_v41, %s1787_s20  ;;  %862 = vrot.lane.b32.xlu2 %v794_v43, %s1787_s20 }
 0x16d   : > { %v725_v44 = vpop.permute.xlu0 %724 }
 0x16e   : > { %v787_v45 = vsel %vm2249_vm13, %v2060_v1, %v725_v44 }
 0x16f   : > { %848 = vrot.lane.b32.xlu0 %v787_v45, %s1787_s20  ;;  %v729_v46 = vpop.permute.xlu1 %728  ;;  %v745_v42 = vpop.permute.xlu2 %744 }
 0x170   : > { %v789_v47 = vsel %vm2249_vm13, %v2063_v2, %v729_v46  ;;  %v797_v48 = vsel %vm2249_vm13, %v2124_v25, %v745_v42 }
 0x171   : > { %852 = vrot.lane.b32.xlu1 %v789_v47, %s1787_s20  ;;  %868 = vrot.lane.b32.xlu2 %v797_v48, %s1787_s20 }
 0x175   : > { %v731_v50 = vpop.permute.xlu0 %730 }
 0x176   : > { %v790_v51 = vsel %vm2249_vm13, %v2075_v4, %v731_v50 }
 0x177   : > { %854 = vrot.lane.b32.xlu0 %v790_v51, %s1787_s20  ;;  %v735_v52 = vpop.permute.xlu1 %734  ;;  %v751_v53 = vpop.permute.xlu2 %750 }
 0x178   : > { %v792_v29 = vsel %vm2249_vm13, %v2078_v5, %v735_v52  ;;  %v800_v13 = vsel %vm2249_vm13, %v2133_v37, %v751_v53 }
 0x179   : > { %858 = vrot.lane.b32.xlu1 %v792_v29, %s1787_s20  ;;  %874 = vrot.lane.b32.xlu2 %v800_v13, %s1787_s20 }
 0x17d   : > { %v737_v14 = vpop.permute.xlu0 %736 }
 0x17e   : > { %v793_v16 = vsel %vm2249_vm13, %v2085_v6, %v737_v14 }
 0x17f   : > { %860 = vrot.lane.b32.xlu0 %v793_v16, %s1787_s20  ;;  %v741_v18 = vpop.permute.xlu1 %740 }
 0x180   : > { %v795_v19 = vsel %vm2249_vm13, %v2088_v8, %v741_v18 }
 0x181   : > { %864 = vrot.lane.b32.xlu1 %v795_v19, %s1787_s20 }
 0x185   : > { %v743_v20 = vpop.permute.xlu0 %742 }
 0x186   : > { %v796_v21 = vsel %vm2249_vm13, %v2095_v9, %v743_v20 }
 0x187   : > { %866 = vrot.lane.b32.xlu0 %v796_v21, %s1787_s20  ;;  %v747_v22 = vpop.permute.xlu1 %746 }
 0x188   : > { %v798_v23 = vsel %vm2249_vm13, %v2098_v10, %v747_v22 }
 0x189   : > { %870 = vrot.lane.b32.xlu1 %v798_v23, %s1787_s20 }
 0x18d   : > { %v749_v24 = vpop.permute.xlu0 %748 }
 0x18e   : > { %v799_v26 = vsel %vm2249_vm13, %v2105_v11, %v749_v24 }
 0x18f   : > { %872 = vrot.lane.b32.xlu0 %v799_v26, %s1787_s20  ;;  %v753_v27 = vpop.permute.xlu1 %752 }
 0x190   : > { %v801_v28 = vsel %vm2249_vm13, %v2108_v12, %v753_v27 }
 0x191   : > { %876 = vrot.lane.b32.xlu1 %v801_v28, %s1787_s20 }
 0x19b   : > { %v833_v33 = vpop.permute.xlu2 %832 }
 0x19c   : > { %v903_v34 = vsel %vm2350_vm14, %v2018_v57, %v833_v33 }
 0x19d   : > { %956 = vrot.lane.b32.xlu2 %v903_v34, %s1787_s20 }
 0x1a3   : > { %v839_v35 = vpop.permute.xlu2 %838 }
 0x1a4   : > { %v906_v54 = vsel %vm2350_vm14, %v2023_v58, %v839_v35 }
 0x1a5   : > { %962 = vrot.lane.b32.xlu2 %v906_v54, %s1787_s20 }
 0x1ab   : > { %v845_v36 = vpop.permute.xlu2 %844 }
 0x1ac   : > { %v909_v38 = vsel %vm2350_vm14, %v2038_v61, %v845_v36 }
 0x1ad   : > { %968 = vrot.lane.b32.xlu2 %v909_v38, %s1787_s20 }
 0x1b3   : > { %v851_v40 = vpop.permute.xlu2 %850 }
 0x1b4   : > { %v912_v41 = vsel %vm2350_vm14, %v2053_v0, %v851_v40 }
 0x1b5   : > { %974 = vrot.lane.b32.xlu2 %v912_v41, %s1787_s20 }
 0x1b6   : > { %v835_v43 = vpop.permute.xlu1 %834 }
 0x1b7   : > { %v904_v44 = vsel %vm2350_vm14, %v2010_v15, %v835_v43 }
 0x1b8   : > { %958 = vrot.lane.b32.xlu1 %v904_v44, %s1787_s20 }
 0x1bb   : > { %v857_v45 = vpop.permute.xlu2 %856 }
 0x1bc   : > { %v915_v46 = vsel %vm2350_vm14, %v2068_v3, %v857_v45 }
 0x1bd   : > { %980 = vrot.lane.b32.xlu2 %v915_v46, %s1787_s20 }
 0x1c3   : > { %v863_v21 = vpop.permute.xlu2 %862 }
 0x1c4   : > { %v918_v38 = vsel %vm2350_vm14, %v2115_v17, %v863_v21 }
 0x1c9   : > { %v831_v42 = vpop.permute.xlu0 %830 }
 0x1ca   : > { %v902_v47 = vsel %vm2350_vm14, %v2015_v55, %v831_v42 }
 0x1cb   : > { %954 = vrot.lane.b32.xlu0 %v902_v47, %s1787_s20  ;;  %v869_v27 = vpop.permute.xlu2 %868  ;;  %v928_v47 = vstv %s927_s4  ;;  %s1732_s4 = scalar_lea.hbm %s2817_s3, 384 }
 0x1cc   : > { %v921_v33 = vsel %vm2350_vm14, %v2124_v25, %v869_v27  ;;  %vm2451_vm15 = vcmp.eq.s32.totalorder %v928_v47, 1  ;;  %p1734_p10 = scmp.lt.s32.totalorder %s1732_s4, %s1728_s28 }
 0x1ce   : > { %p1735_p11 = por %p1734_p10, %p1733_p9 }
 0x1d0   : > { %p1736_p12 = pnand %p1735_p11, %p1731_p8 }
 0x1d1   : > { %v837_v48 = vpop.permute.xlu0 %836 }
 0x1d2   : > { %v905_v50 = vsel %vm2350_vm14, %v2030_v59, %v837_v48 }
 0x1d3   : > { %960 = vrot.lane.b32.xlu0 %v905_v50, %s1787_s20  ;;  %v841_v51 = vpop.permute.xlu1 %840  ;;  %v875_v45 = vpop.permute.xlu2 %874 }
 0x1d4   : > { %v907_v52 = vsel %vm2350_vm14, %v2033_v60, %v841_v51  ;;  %v924_v46 = vsel %vm2350_vm14, %v2133_v37, %v875_v45 }
 0x1d5   : > { %964 = vrot.lane.b32.xlu1 %v907_v52, %s1787_s20 }
 0x1d9   : > { %v843_v53 = vpop.permute.xlu0 %842 }
 0x1da   : > { %v908_v29 = vsel %vm2350_vm14, %v2045_v62, %v843_v53 }
 0x1db   : > { %966 = vrot.lane.b32.xlu0 %v908_v29, %s1787_s20  ;;  %v847_v13 = vpop.permute.xlu1 %846 }
 0x1dc   : > { %v910_v14 = vsel %vm2350_vm14, %v2048_v63, %v847_v13 }
 0x1dd   : > { %970 = vrot.lane.b32.xlu1 %v910_v14, %s1787_s20 }
 0x1e1   : > { %v849_v16 = vpop.permute.xlu0 %848 }
 0x1e2   : > { %v911_v18 = vsel %vm2350_vm14, %v2060_v1, %v849_v16 }
 0x1e3   : > { %972 = vrot.lane.b32.xlu0 %v911_v18, %s1787_s20  ;;  %v853_v19 = vpop.permute.xlu1 %852 }
 0x1e4   : > { %v913_v20 = vsel %vm2350_vm14, %v2063_v2, %v853_v19 }
 0x1e5   : > { %976 = vrot.lane.b32.xlu1 %v913_v20, %s1787_s20  ;;  %v2471_v20 = vstv %s2121_s25  ;;  %s1506_s25 = sshll.u32 %s2730_s11, 4  ;;  %s1507_s25 = int_to_ptr.vmem [resolvable:$true] %s1506_s25 }
 0x1e9   : > { %v855_v22 = vpop.permute.xlu0 %854 }
 0x1ea   : > { %v914_v23 = vsel %vm2350_vm14, %v2075_v4, %v855_v22 }
 0x1eb   : > { %978 = vrot.lane.b32.xlu0 %v914_v23, %s1787_s20  ;;  %v859_v24 = vpop.permute.xlu1 %858 }
 0x1ec   : > { %v916_v26 = vsel %vm2350_vm14, %v2078_v5, %v859_v24 }
 0x1ed   : > { %982 = vrot.lane.b32.xlu1 %v916_v26, %s1787_s20 }
 0x1f1   : > { %v861_v28 = vpop.permute.xlu0 %860 }
 0x1f2   : > { %v917_v30 = vsel %vm2350_vm14, %v2085_v6, %v861_v28 }
 0x1f3   : > { %984 = vrot.lane.b32.xlu0 %v917_v30, %s1787_s20  ;;  %v865_v34 = vpop.permute.xlu1 %864 }
 0x1f5   : > { %992 = vrot.lane.b32.xlu1 %v921_v33, %s1787_s20 }
 0x1f7   : > { %v957_v42 = vpop.permute.xlu2 %956 }
 0x1f8   : > { %v1027_v53 = vsel %vm2451_vm15, %v2018_v57, %v957_v42 }
 0x1f9   : > { %v867_v35 = vpop.permute.xlu0 %866  ;;  %v1051_v14 = vmul.f32 %v1027_v53, %v1892_v7 }
 0x1fa   : > { %v920_v54 = vsel %vm2350_vm14, %v2095_v9, %v867_v35 }
 0x1fb   : > { %990 = vrot.lane.b32.xlu2 %v920_v54, %s1787_s20  ;;  %v871_v36 = vpop.permute.xlu1 %870 }
 0x1fc   : > { %v922_v40 = vsel %vm2350_vm14, %v2098_v10, %v871_v36  ;;  %v919_v10 = vsel %vm2350_vm14, %v2088_v8, %v865_v34 }
 0x1fd   : > { %986 = vrot.lane.b32.xlu1 %v918_v38, %s1787_s20  ;;  %994 = vrot.lane.b32.xlu0 %v922_v40, %s1787_s20 }
 0x201   : > { %v873_v41 = vpop.permute.xlu0 %872 }
 0x202   : > { %v923_v43 = vsel %vm2350_vm14, %v2105_v11, %v873_v41 }
 0x203   : > { %996 = vrot.lane.b32.xlu2 %v923_v43, %s1787_s20  ;;  %v877_v44 = vpop.permute.xlu1 %876 }
 0x204   : > { %v925_v17 = vsel %vm2350_vm14, %v2108_v12, %v877_v44  ;;  %v963_v12 = vpop.permute.xlu2 %962 }
 0x205   : > { %1000 = vrot.lane.b32.xlu1 %v925_v17, %s1787_s20  ;;  %988 = vrot.lane.b32.xlu0 %v919_v10, %s1787_s20  ;;  %v1030_v31 = vsel %vm2451_vm15, %v2023_v58, %v963_v12 }
 0x206   : > { %v1054_v52 = vmul.f32 %v1030_v31, %v1892_v7 }
 0x208   : > { %v1078_v16 = vmax.f32 %v1054_v52, 0.0 }
 0x20a   : > { %v1102_v19 = vmin.f32 %v1078_v16, 1.0 }
 0x20b   : > { %998 = vrot.lane.b32.xlu2 %v924_v46, %s1787_s20 }
 0x20c   : > { %v969_v29 = vpop.permute.xlu2 %968  ;;  %v1127_v57 = vmul.f32 %v2471_v20, %v1102_v19 }
 0x20d   : > { %v1033_v58 = vsel %vm2451_vm15, %v2038_v61, %v969_v29 }
 0x20e   : > { %v1057_v24 = vmul.f32 %v1033_v58, %v1892_v7  ;;  %v1157_v34 = vadd.f32 %v2142_v56, %v1127_v57 }
 0x210   : > { %v1081_v35 = vmax.f32 %v1057_v24, 0.0  ;;  %v1181_v43 = vmax.f32 %v1157_v34, 0.0 }
 0x212   : > { %v1105_v44 = vmin.f32 %v1081_v35, 1.0  ;;  %v2524_v35 = vstv %s1290_s5 }
 0x214   : > { %v975_v27 = vpop.permute.xlu2 %974  ;;  %v1130_v52 = vmul.f32 %v2471_v20, %v1105_v44 }
 0x215   : > { %v1036_v36 = vsel %vm2451_vm15, %v2053_v0, %v975_v27 }
 0x216   : > { %v1060_v0 = vmul.f32 %v1036_v36, %v1892_v7  ;;  %v1160_v57 = vadd.f32 %v2139_v49, %v1130_v52 }
 0x21c   : > { %v981_v47 = vpop.permute.xlu2 %980 }
 0x21d   : > { %v1039_v16 = vsel %vm2451_vm15, %v2068_v3, %v981_v47 }
 0x22a   : > { %v959_v48 = vpop.permute.xlu1 %958 }
 0x22b   : > { %v1028_v50 = vsel %vm2451_vm15, %v2010_v15, %v959_v48  ;;  %v1075_v15 = vmax.f32 %v1051_v14, 0.0  ;;  %v1084_v14 = vmax.f32 %v1060_v0, 0.0 }
 0x22c   : > { %v1052_v51 = vmul.f32 %v1028_v50, %v1892_v7 }
 0x22d   : > { %v1099_v23 = vmin.f32 %v1075_v15, 1.0 }
 0x22e   : > { %v1076_v13 = vmax.f32 %v1052_v51, 0.0  ;;  %v2501_v51 = vmin.f32 %v1181_v43, 1.0 }
 0x22f   : > { %v1124_v33 = vmul.f32 %v2471_v20, %v1099_v23 }
 0x230   : > { %v1100_v18 = vmin.f32 %v1076_v13, 1.0  ;;  %v1249_v23 = vmul.f32 0.114, %v2501_v51 }
 0x231   : > { %v1154_v41 = vadd.f32 %v2142_v56, %v1124_v33  ;;  %v1063_v33 = vmul.f32 %v1039_v16, %v1892_v7 }
 0x232   : > { %v1125_v21 = vmul.f32 %v2471_v20, %v1100_v18 }
 0x234   : > { %v1155_v30 = vadd.f32 %v2142_v56, %v1125_v21 }
 0x23d   : > { %v955_v22 = vpop.permute.xlu0 %954 }
 0x23e   : > { %v1026_v26 = vsel %vm2451_vm15, %v2015_v55, %v955_v22  ;;  %v1179_v55 = vmax.f32 %v1155_v30, 0.0 }
 0x23f   : > { %v1050_v28 = vmul.f32 %v1026_v26, %v1892_v7 }
 0x240   : > { %v1203_v12 = vmin.f32 %v1179_v55, 1.0 }
 0x241   : > { %v1074_v61 = vmax.f32 %v1050_v28, 0.0 }
 0x242   : > { %v1233_v18 = vmul.f32 0.587, %v1203_v12 }
 0x243   : > { %v1098_v54 = vmin.f32 %v1074_v61, 1.0  ;;  %v1108_v61 = vmin.f32 %v1084_v14, 1.0 }
 0x245   : > { %v1123_v38 = vmul.f32 %v2471_v20, %v1098_v54  ;;  %v961_v40 = vpop.permute.xlu0 %960 }
 0x246   : > { %v1029_v17 = vsel %vm2451_vm15, %v2030_v59, %v961_v40  ;;  %v1178_v59 = vmax.f32 %v1154_v41, 0.0  ;;  %v1184_v40 = vmax.f32 %v1160_v57, 0.0 }
 0x247   : > { %v1153_v10 = vadd.f32 %v2142_v56, %v1123_v38  ;;  %v1053_v45 = vmul.f32 %v1029_v17, %v1892_v7  ;;  %v965_v46 = vpop.permute.xlu1 %964 }
 0x248   : > { %v1031_v42 = vsel %vm2451_vm15, %v2033_v60, %v965_v46  ;;  %v2508_v60 = vstv %s2484_s7  ;;  %v1202_v22 = vmin.f32 %v1178_v59, 1.0 }
 0x249   : > { %v1177_v48 = vmax.f32 %v1153_v10, 0.0  ;;  %v1077_v50 = vmax.f32 %v1053_v45, 0.0  ;;  %v1055_v31 = vmul.f32 %v1031_v42, %v1892_v7  ;;  %v1268_v46 = vmul.f32 %v2508_v60, %v1203_v12 }
 0x24a   : > { %v1226_v38 = vmul.f32 0.2989, %v1202_v22  ;;  %v2529_v43 = vmul.f32 %v2508_v60, %v1202_v22  ;;  %v1087_v42 = vmax.f32 %v1063_v33, 0.0 }
 0x24b   : > { %v1201_v53 = vmin.f32 %v1177_v48, 1.0  ;;  %v1101_v29 = vmin.f32 %v1077_v50, 1.0  ;;  %v1079_v13 = vmax.f32 %v1055_v31, 0.0 }
 0x24d   : > { %v1225_v15 = vmul.f32 0.2989, %v1201_v53  ;;  %v1126_v19 = vmul.f32 %v2471_v20, %v1101_v29  ;;  %v1103_v58 = vmin.f32 %v1079_v13, 1.0  ;;  %v967_v21 = vpop.permute.xlu0 %966  ;;  %v1266_v0 = vmul.f32 %v2508_v60, %v1201_v53 }
 0x24e   : > { %v1032_v24 = vsel %vm2451_vm15, %v2045_v62, %v967_v21  ;;  %v1208_v21 = vmin.f32 %v1184_v40, 1.0 }
 0x24f   : > { %v1241_v26 = vadd.f32 %v1233_v18, %v1225_v15  ;;  %v1156_v3 = vadd.f32 %v2142_v56, %v1126_v19  ;;  %v1128_v27 = vmul.f32 %v2471_v20, %v1103_v58  ;;  %v1056_v28 = vmul.f32 %v1032_v24, %v1892_v7  ;;  %v971_v30 = vpop.permute.xlu1 %970 }
 0x250   : > { %v1034_v34 = vsel %vm2451_vm15, %v2048_v63, %v971_v30  ;;  %v1133_v63 = vmul.f32 %v2471_v20, %v1108_v61 }
 0x251   : > { %v1180_v54 = vmax.f32 %v1156_v3, 0.0  ;;  %v1158_v62 = vadd.f32 %v2142_v56, %v1128_v27  ;;  %v1080_v36 = vmax.f32 %v1056_v28, 0.0  ;;  %v1058_v55 = vmul.f32 %v1034_v34, %v1892_v7 }
 0x252   : > { %v1257_v41 = vadd.f32 %v1249_v23, %v1241_v26  ;;  %v1163_v22 = vadd.f32 %v2139_v49, %v1133_v63  ;;  %v1111_v28 = vmin.f32 %v1087_v42, 1.0 }
 0x253   : > { %v2531_v44 = vmin.f32 %v1180_v54, 1.0  ;;  %v1182_v17 = vmax.f32 %v1158_v62, 0.0  ;;  %v1104_v10 = vmin.f32 %v1080_v36, 1.0  ;;  %v1082_v45 = vmax.f32 %v1058_v55, 0.0 }
 0x254   : > { %v2536_v56 = vmul.f32 %v2524_v35, %v1257_v41  ;;  %v2565_v62 = vmul.f32 %v2508_v60, %v2501_v51  ;;  %v2567_v36 = vmul.f32 0.2989, %v1208_v21  ;;  %v1187_v55 = vmax.f32 %v1163_v22, 0.0 }
 0x255   : > { %v1234_v47 = vmul.f32 0.587, %v2531_v44  ;;  %v1206_v48 = vmin.f32 %v1182_v17, 1.0  ;;  %v1106_v50 = vmin.f32 %v1082_v45, 1.0  ;;  %v991_v31 = vpop.permute.xlu2 %990  ;;  %v973_v59 = vpop.permute.xlu0 %972  ;;  %v1129_v16 = vmul.f32 %v2471_v20, %v1104_v10 }
 0x256   : > { %v1044_v52 = vsel %vm2451_vm15, %v2095_v9, %v991_v31  ;;  %v1035_v12 = vsel %vm2451_vm15, %v2060_v1, %v973_v59  ;;  %v1302_v29 = vadd.f32 %v2536_v56, %v1268_v46  ;;  %v1300_v13 = vadd.f32 %v2536_v56, %v1266_v0 }
 0x257   : > { %v1242_v53 = vadd.f32 %v1234_v47, %v1226_v38  ;;  %v1250_v14 = vmul.f32 0.114, %v1206_v48  ;;  %v1131_v18 = vmul.f32 %v2471_v20, %v1106_v50  ;;  %v977_v15 = vpop.permute.xlu1 %976  ;;  %v1068_v19 = vmul.f32 %v1044_v52, %v1892_v7 }
 0x258   : > { %v1059_v58 = vmul.f32 %v1035_v12, %v1892_v7  ;;  %v1037_v9 = vsel %vm2451_vm15, %v2063_v2, %v977_v15  ;;  %v1326_v1 = vmax.f32 %v1302_v29, 0.0  ;;  %v1324_v57 = vmax.f32 %v1300_v13, 0.0 }
 0x259   : > { %v1061_v23 = vmul.f32 %v1037_v9, %v1892_v7  ;;  %v1092_v24 = vmax.f32 %v1068_v19, 0.0  ;;  %v1258_v27 = vadd.f32 %v1250_v14, %v1242_v53  ;;  %v1161_v30 = vadd.f32 %v2139_v49, %v1131_v18 }
 0x25a   : > { %v1083_v26 = vmax.f32 %v1059_v58, 0.0  ;;  %v1350_v3 = vmin.f32 %v1326_v1, 1.0  ;;  %v1348_v33 = vmin.f32 %v1324_v57, 1.0  ;;  %v1159_v34 = vadd.f32 %v2139_v49, %v1129_v16 }
 0x25b   : > { %v1085_v61 = vmax.f32 %v1061_v23, 0.0  ;;  %v2561_v2 = vmul.f32 %v2524_v35, %v1258_v27  ;;  %v1116_v38 = vmin.f32 %v1092_v24, 1.0  ;;  %v1271_v63 = vmul.f32 %v2508_v60, %v1206_v48 }
 0x25c   : > { %v1107_v54 = vmin.f32 %v1083_v26, 1.0  ;;  %1400 = vrot.lane.b32.xlu1 %v1350_v3, %s1788_s8  ;;  %1396 = vrot.lane.b32.xlu0 %v1348_v33, %s1788_s8  ;;  %v1136_v46 = vmul.f32 %v2471_v20, %v1111_v28  ;;  %v1185_v0 = vmax.f32 %v1161_v30, 0.0  ;;  %v1183_v31 = vmax.f32 %v1159_v34, 0.0 }
 0x25d   : > { %v1109_v40 = vmin.f32 %v1085_v61, 1.0  ;;  %v997_v41 = vpop.permute.xlu2 %996  ;;  %v979_v17 = vpop.permute.xlu0 %978  ;;  %v1305_v52 = vadd.f32 %v2561_v2, %v1271_v63  ;;  %v1269_v29 = vmul.f32 %v2508_v60, %v2531_v44  ;;  %v1211_v13 = vmin.f32 %v1187_v55, 1.0 }
 0x25e   : > { %v1132_v10 = vmul.f32 %v2471_v20, %v1107_v54  ;;  %v1047_v45 = vsel %vm2451_vm15, %v2105_v11, %v997_v41  ;;  %v1038_v51 = vsel %vm2451_vm15, %v2075_v4, %v979_v17  ;;  %v1141_v4 = vmul.f32 %v2471_v20, %v1116_v38 }
 0x25f   : > { %v1134_v42 = vmul.f32 %v2471_v20, %v1109_v40  ;;  %v1062_v47 = vmul.f32 %v1038_v51, %v1892_v7  ;;  %v983_v50 = vpop.permute.xlu1 %982  ;;  %v1071_v48 = vmul.f32 %v1047_v45, %v1892_v7  ;;  %v1329_v16 = vmax.f32 %v1305_v52, 0.0 }
 0x260   : > { %v1162_v59 = vadd.f32 %v2139_v49, %v1132_v10  ;;  %v1040_v11 = vsel %vm2451_vm15, %v2078_v5, %v983_v50  ;;  %v1209_v18 = vmin.f32 %v1185_v0, 1.0  ;;  %v1303_v5 = vadd.f32 %v2561_v2, %v1269_v29 }
 0x261   : > { %v1086_v12 = vmax.f32 %v1062_v47, 0.0  ;;  %v1164_v53 = vadd.f32 %v2139_v49, %v1134_v42  ;;  %v1064_v14 = vmul.f32 %v1040_v11, %v1892_v7  ;;  %v1166_v58 = vadd.f32 %v2152_v32, %v1136_v46 }
 0x262   : > { %v1186_v15 = vmax.f32 %v1162_v59, 0.0  ;;  %v1353_v1 = vmin.f32 %v1329_v16, 1.0  ;;  %v2595_v22 = vmul.f32 %v2508_v60, %v1208_v21  ;;  %v1207_v23 = vmin.f32 %v1183_v31, 1.0 }
 0x263   : > { %v1110_v19 = vmin.f32 %v1086_v12, 1.0  ;;  %v1088_v9 = vmax.f32 %v1064_v14, 0.0  ;;  %v1171_v44 = vadd.f32 %v2154_v39, %v1141_v4  ;;  %v1095_v57 = vmax.f32 %v1071_v48, 0.0 }
 0x264   : > { %v1327_v26 = vmax.f32 %v1303_v5, 0.0  ;;  %v1251_v3 = vmul.f32 0.114, %v1211_v13  ;;  %v1188_v27 = vmax.f32 %v1164_v53, 0.0  ;;  %1406 = vrot.lane.b32.xlu1 %v1353_v1, %s1788_s8  ;;  %v1235_v61 = vmul.f32 0.587, %v1209_v18 }
 0x265   : > { %v999_v49 = vpop.permute.xlu2 %998  ;;  %v985_v24 = vpop.permute.xlu0 %984  ;;  %v1112_v28 = vmin.f32 %v1088_v9, 1.0  ;;  %v2602_v33 = vmin.f32 %v1186_v15, 1.0  ;;  %v1135_v21 = vmul.f32 %v2471_v20, %v1110_v19  ;;  %v1190_v55 = vmax.f32 %v1166_v58, 0.0  ;;  %v1678_v9 = vld [vmem:[%s2007_s19 + $0xc0] sm:$0xff] }
 0x266   : > { %v1048_v30 = vsel %vm2451_vm15, %v2133_v37, %v999_v49  ;;  %v1041_v40 = vsel %vm2451_vm15, %v2085_v6, %v985_v24  ;;  %v1351_v41 = vmin.f32 %v1327_v26, 1.0  ;;  %v1227_v17 = vmul.f32 0.2989, %v1207_v23 }
 0x267   : > { %v1072_v34 = vmul.f32 %v1048_v30, %v1892_v7  ;;  %v993_v54 = vpop.permute.xlu1 %992  ;;  %v1137_v38 = vmul.f32 %v2471_v20, %v1112_v28  ;;  %v1195_v37 = vmax.f32 %v1171_v44, 0.0  ;;  %v1119_v10 = vmin.f32 %v1095_v57, 1.0 }
 0x268   : > { %v1212_v51 = vmin.f32 %v1188_v27, 1.0  ;;  %v1065_v63 = vmul.f32 %v1041_v40, %v1892_v7  ;;  %1402 = vrot.lane.b32.xlu0 %v1351_v41, %s1788_s8  ;;  %v1301_v46 = vadd.f32 %v2561_v2, %v2529_v43  ;;  %v1045_v0 = vsel %vm2451_vm15, %v2124_v25, %v993_v54 }
 0x269   : > { %v1096_v45 = vmax.f32 %v1072_v34, 0.0  ;;  %v1243_v42 = vadd.f32 %v1235_v61, %v1227_v17  ;;  %v1236_v6 = vmul.f32 0.587, %v2602_v33  ;;  %v1165_v47 = vadd.f32 %v2152_v32, %v1135_v21 }
 0x26a   : > { %v1167_v50 = vadd.f32 %v2152_v32, %v1137_v38  ;;  %v1325_v59 = vmax.f32 %v1301_v46, 0.0  ;;  %v1069_v11 = vmul.f32 %v1045_v0, %v1892_v7  ;;  %v1304_v52 = vadd.f32 %v2536_v56, %v2565_v62 }
 0x26b   : > { %v1120_v31 = vmin.f32 %v1096_v45, 1.0  ;;  %v2623_v4 = vmin.f32 %v1190_v55, 1.0  ;;  %v2625_v43 = vmin.f32 %v1195_v37, 1.0  ;;  %v1144_v25 = vmul.f32 %v2471_v20, %v1119_v10 }
 0x26c   : > { %v2629_v2 = vmul.f32 %v2508_v60, %v1211_v13  ;;  %v1252_v48 = vmul.f32 0.114, %v1212_v51  ;;  %v1089_v12 = vmax.f32 %v1065_v63, 0.0  ;;  %v1349_v29 = vmin.f32 %v1325_v59, 1.0 }
 0x26d   : > { %v1093_v53 = vmax.f32 %v1069_v11, 0.0  ;;  %v1244_v14 = vadd.f32 %v1236_v6, %v2567_v36  ;;  %v1189_v16 = vmax.f32 %v1165_v47, 0.0  ;;  %v1191_v15 = vmax.f32 %v1167_v50, 0.0 }
 0x26e   : > { %v1259_v56 = vadd.f32 %v1251_v3, %v1243_v42  ;;  %v1145_v5 = vmul.f32 %v2471_v20, %v1120_v31  ;;  %1398 = vrot.lane.b32.xlu2 %v1349_v29, %s1788_s8  ;;  %v1328_v58 = vmax.f32 %v1304_v52, 0.0  ;;  %v1274_v13 = vmul.f32 %v2508_v60, %v1209_v18  ;;  %v1679_v3 = vld [vmem:[%s2007_s19 + $0xf0] sm:$0xff] }
 0x26f   : > { %v987_v62 = vpop.permute.xlu1 %986  ;;  %v995_v19 = vpop.permute.xlu0 %994  ;;  %v1117_v44 = vmin.f32 %v1093_v53, 1.0  ;;  %v1272_v57 = vmul.f32 %v2508_v60, %v1207_v23  ;;  %v2642_v24 = vadd.f32 %v2154_v39, %v1144_v25  ;;  %v1113_v26 = vmin.f32 %v1089_v12, 1.0 }
 0x270   : > { %v1042_v1 = vsel %vm2451_vm15, %v1678_v9, %v987_v62  ;;  %v1294_v36 = vmul.f32 %v2524_v35, %v1259_v56  ;;  %v1046_v27 = vsel %vm2451_vm15, %v1679_v3, %v995_v19  ;;  %v1260_v18 = vadd.f32 %v1252_v48, %v1244_v14  ;;  %v1680_v56 = vld [vmem:[%s2007_s19 + $0x110] sm:$0xff]  ;;  %v1681_v19 = vld [vmem:[%s2007_s19 + $0xc8] sm:$0xff] }
 0x271   : > { %v1066_v49 = vmul.f32 %v1042_v1, %v1892_v7  ;;  %v2647_v28 = vmin.f32 %v1189_v16, 1.0  ;;  %v2649_v30 = vmin.f32 %v1191_v15, 1.0  ;;  %v1352_v34 = vmin.f32 %v1328_v58, 1.0 }
 0x272   : > { %v1308_v61 = vadd.f32 %v1294_v36, %v1274_v13  ;;  %v1306_v21 = vadd.f32 %v1294_v36, %v1272_v57  ;;  %v1070_v23 = vmul.f32 %v1046_v27, %v1892_v7  ;;  %v1295_v55 = vmul.f32 %v2524_v35, %v1260_v18 }
 0x273   : > { %v1090_v54 = vmax.f32 %v1066_v49, 0.0  ;;  %v1175_v38 = vadd.f32 %v2154_v39, %v1145_v5  ;;  %v1142_v40 = vmul.f32 %v2471_v20, %v1117_v44  ;;  %v1138_v37 = vmul.f32 %v2471_v20, %v1113_v26 }
 0x274   : > { %v1332_v41 = vmax.f32 %v1308_v61, 0.0  ;;  %v1330_v17 = vmax.f32 %v1306_v21, 0.0  ;;  %v1094_v45 = vmax.f32 %v1070_v23, 0.0  ;;  %v1307_v63 = vadd.f32 %v1295_v55, %v2595_v22 }
 0x275   : > { %v1114_v10 = vmin.f32 %v1090_v54, 1.0  ;;  %v1198_v46 = vmax.f32 %v2642_v24, 0.0  ;;  %v1277_v6 = vmul.f32 %v2508_v60, %v1212_v51  ;;  %v1229_v47 = vmul.f32 0.2989, %v2647_v28 }
 0x276   : > { %v1356_v0 = vmin.f32 %v1332_v41, 1.0  ;;  %v1354_v42 = vmin.f32 %v1330_v17, 1.0  ;;  %1404 = vrot.lane.b32.xlu2 %v1352_v34, %s1788_s8  ;;  %v1118_v31 = vmin.f32 %v1094_v45, 1.0  ;;  %v1331_v59 = vmax.f32 %v1307_v63, 0.0 }
 0x277   : > { %v1139_v50 = vmul.f32 %v2471_v20, %v1114_v10  ;;  %v1001_v11 = vpop.permute.xlu1 %1000  ;;  %v989_v52 = vpop.permute.xlu0 %988  ;;  %v1237_v22 = vmul.f32 0.587, %v2649_v30  ;;  %v1172_v25 = vadd.f32 %v2154_v39, %v1142_v40  ;;  %v1311_v51 = vadd.f32 %v1295_v55, %v1277_v6 }
 0x278   : > { %1412 = vrot.lane.b32.xlu1 %v1356_v0, %s1788_s8  ;;  %1408 = vrot.lane.b32.xlu0 %v1354_v42, %s1788_s8  ;;  %v1275_v48 = vmul.f32 %v2508_v60, %v2602_v33  ;;  %v1199_v12 = vmax.f32 %v1175_v38, 0.0  ;;  %v1168_v29 = vadd.f32 %v2152_v32, %v1138_v37  ;;  %v1143_v14 = vmul.f32 %v2471_v20, %v1118_v31 }
 0x279   : > { %v1169_v53 = vadd.f32 %v2152_v32, %v1139_v50  ;;  %v1335_v16 = vmax.f32 %v1311_v51, 0.0  ;;  %v1049_v62 = vsel %vm2451_vm15, %v1680_v56, %v1001_v11  ;;  %v1043_v5 = vsel %vm2451_vm15, %v1681_v19, %v989_v52 }
 0x27a   : > { %v1309_v15 = vadd.f32 %v1295_v55, %v1275_v48  ;;  %v1173_v33 = vadd.f32 %v2154_v39, %v1143_v14  ;;  %v1355_v13 = vmin.f32 %v1331_v59, 1.0  ;;  %v1073_v9 = vmul.f32 %v1049_v62, %v1892_v7 }
 0x27b   : > { %v1193_v58 = vmax.f32 %v1169_v53, 0.0  ;;  %v1196_v1 = vmax.f32 %v1172_v25, 0.0  ;;  %v1067_v57 = vmul.f32 %v1043_v5, %v1892_v7  ;;  %v1310_v49 = vadd.f32 %v1294_v36, %v2629_v2 }
 0x27c   : > { %v1333_v44 = vmax.f32 %v1309_v15, 0.0  ;;  %v1223_v24 = vmin.f32 %v1199_v12, 1.0  ;;  %v1197_v3 = vmax.f32 %v1173_v33, 0.0  ;;  %v1097_v27 = vmax.f32 %v1073_v9, 0.0 }
 0x27d   : > { %v2681_v26 = vmin.f32 %v1193_v58, 1.0  ;;  %v1192_v18 = vmax.f32 %v1168_v29, 0.0  ;;  %v1359_v8 = vmin.f32 %v1335_v16, 1.0  ;;  %v1091_v21 = vmax.f32 %v1067_v57, 0.0 }
 0x27e   : > { %v1357_v61 = vmin.f32 %v1333_v44, 1.0  ;;  %v1245_v34 = vadd.f32 %v1237_v22, %v1229_v47  ;;  %v1221_v23 = vmin.f32 %v1197_v3, 1.0  ;;  %1410 = vrot.lane.b32.xlu2 %v1355_v13, %s1788_s8  ;;  %v1121_v55 = vmin.f32 %v1097_v27, 1.0 }
 0x27f   : > { %v1253_v54 = vmul.f32 0.114, %v2681_v26  ;;  %v1231_v7 = vmul.f32 0.2989, %v2625_v43  ;;  %v1220_v38 = vmin.f32 %v1196_v1, 1.0  ;;  %v1115_v2 = vmin.f32 %v1091_v21, 1.0 }
 0x280   : > { %1418 = vrot.lane.b32.xlu1 %v1359_v8, %s1788_s8  ;;  %1414 = vrot.lane.b32.xlu0 %v1357_v61, %s1788_s8  ;;  %v1334_v36 = vmax.f32 %v1310_v49, 0.0  ;;  %v1222_v40 = vmin.f32 %v1198_v46, 1.0  ;;  %v1239_v41 = vmul.f32 0.587, %v1221_v23  ;;  %v1146_v17 = vmul.f32 %v2471_v20, %v1121_v55 }
 0x281   : > { %v1261_v37 = vadd.f32 %v1253_v54, %v1245_v34  ;;  %v1255_v10 = vmul.f32 0.114, %v1223_v24  ;;  %v1216_v45 = vmin.f32 %v1192_v18, 1.0  ;;  %v1140_v63 = vmul.f32 %v2471_v20, %v1115_v2 }
 0x282   : > { %v1280_v0 = vmul.f32 %v2508_v60, %v2649_v30  ;;  %v1247_v42 = vadd.f32 %v1239_v41, %v1231_v7  ;;  %v1176_v6 = vadd.f32 %v2154_v39, %v1146_v17  ;;  %v1278_v50 = vmul.f32 %v2508_v60, %v2647_v28 }
 0x283   : > { %v1296_v47 = vmul.f32 %v2524_v35, %v1261_v37  ;;  %v1230_v46 = vmul.f32 0.2989, %v2623_v4  ;;  %v1232_v31 = vmul.f32 0.2989, %v1220_v38  ;;  %v1170_v59 = vadd.f32 %v2152_v32, %v1140_v63 }
 0x284   : > { %v1358_v11 = vmin.f32 %v1334_v36, 1.0  ;;  %v1200_v52 = vmax.f32 %v1176_v6, 0.0  ;;  %v1263_v25 = vadd.f32 %v1255_v10, %v1247_v42  ;;  %v1240_v51 = vmul.f32 0.587, %v1222_v40 }
 0x285   : > { %v1314_v22 = vadd.f32 %v1296_v47, %v1280_v0  ;;  %v1312_v20 = vadd.f32 %v1296_v47, %v1278_v50  ;;  %v1238_v30 = vmul.f32 0.587, %v1216_v45  ;;  %v1194_v48 = vmax.f32 %v1170_v59, 0.0 }
 0x286   : > { %v1286_v39 = vmul.f32 %v2508_v60, %v1221_v23  ;;  %v1224_v12 = vmin.f32 %v1200_v52, 1.0  ;;  %1416 = vrot.lane.b32.xlu2 %v1358_v11, %s1788_s8  ;;  %v1298_v53 = vmul.f32 %v2524_v35, %v1263_v25  ;;  %v1248_v14 = vadd.f32 %v1240_v51, %v1232_v31 }
 0x287   : > { %v1338_v29 = vmax.f32 %v1314_v22, 0.0  ;;  %v1336_v28 = vmax.f32 %v1312_v20, 0.0  ;;  %v1218_v16 = vmin.f32 %v1194_v48, 1.0  ;;  %v1284_v32 = vmul.f32 %v2508_v60, %v2625_v43 }
 0x288   : > { %v1288_v15 = vmul.f32 %v2508_v60, %v1223_v24  ;;  %v1256_v56 = vmul.f32 0.114, %v1224_v12  ;;  %v1320_v5 = vadd.f32 %v1298_v53, %v1286_v39  ;;  %v1246_v58 = vadd.f32 %v1238_v30, %v1230_v46 }
 0x289   : > { %v1362_v62 = vmin.f32 %v1338_v29, 1.0  ;;  %v1360_v19 = vmin.f32 %v1336_v28, 1.0  ;;  %v1254_v33 = vmul.f32 0.114, %v1218_v16  ;;  %v1318_v13 = vadd.f32 %v1298_v53, %v1284_v32 }
 0x28a   : > { %v1264_v9 = vadd.f32 %v1256_v56, %v1248_v14  ;;  %v1322_v1 = vadd.f32 %v1298_v53, %v1288_v15  ;;  %v1289_v57 = vmul.f32 %v2508_v60, %v1224_v12  ;;  %v1287_v49 = vmul.f32 %v2508_v60, %v1222_v40 }
 0x28b   : > { %1424 = vrot.lane.b32.xlu1 %v1362_v62, %s1788_s8  ;;  %1420 = vrot.lane.b32.xlu0 %v1360_v19, %s1788_s8  ;;  %v1262_v44 = vadd.f32 %v1254_v33, %v1246_v58  ;;  %v1285_v24 = vmul.f32 %v2508_v60, %v1220_v38  ;;  %v1283_v3 = vmul.f32 %v2508_v60, %v1218_v16  ;;  %v1342_v37 = vmax.f32 %v1318_v13, 0.0 }
 0x28c   : > { %v1299_v43 = vmul.f32 %v2524_v35, %v1264_v9  ;;  %v1281_v18 = vmul.f32 %v2508_v60, %v1216_v45  ;;  %v1279_v8 = vmul.f32 %v2508_v60, %v2623_v4  ;;  %v1282_v38 = vmul.f32 %v2508_v60, %v2681_v26 }
 0x28d   : > { %v1297_v27 = vmul.f32 %v2524_v35, %v1262_v44  ;;  %v1344_v4 = vmax.f32 %v1320_v5, 0.0  ;;  %v1366_v63 = vmin.f32 %v1342_v37, 1.0  ;;  %v1346_v46 = vmax.f32 %v1322_v1, 0.0 }
 0x28e   : > { %v1323_v61 = vadd.f32 %v1299_v43, %v1289_v57  ;;  %v1321_v21 = vadd.f32 %v1299_v43, %v1287_v49  ;;  %v1319_v34 = vadd.f32 %v1299_v43, %v1285_v24  ;;  %v1316_v17 = vadd.f32 %v1296_v47, %v1282_v38 }
 0x28f   : > { %v1317_v54 = vadd.f32 %v1297_v27, %v1283_v3  ;;  %v1315_v23 = vadd.f32 %v1297_v27, %v1281_v18  ;;  %v1313_v55 = vadd.f32 %v1297_v27, %v1279_v8  ;;  %v1368_v45 = vmin.f32 %v1344_v4, 1.0 }
 0x290   : > { %v1340_v10 = vmax.f32 %v1316_v17, 0.0  ;;  %v1347_v60 = vmax.f32 %v1323_v61, 0.0  ;;  %v1345_v26 = vmax.f32 %v1321_v21, 0.0  ;;  %v1343_v42 = vmax.f32 %v1319_v34, 0.0 }
 0x291   : > { %v1341_v7 = vmax.f32 %v1317_v54, 0.0  ;;  %v1339_v2 = vmax.f32 %v1315_v23, 0.0  ;;  %v1337_v36 = vmax.f32 %v1313_v55, 0.0  ;;  %v1370_v31 = vmin.f32 %v1346_v46, 1.0 }
 0x292   : > { %v1364_v0 = vmin.f32 %v1340_v10, 1.0  ;;  %v1371_v6 = vmin.f32 %v1347_v60, 1.0  ;;  %v1369_v47 = vmin.f32 %v1345_v26, 1.0  ;;  %v1367_v50 = vmin.f32 %v1343_v42, 1.0 }
 0x293   : > { %v1365_v40 = vmin.f32 %v1341_v7, 1.0  ;;  %v1363_v41 = vmin.f32 %v1339_v2, 1.0  ;;  %v1361_v35 = vmin.f32 %v1337_v36, 1.0 }
 0x295   : > { %1430 = vrot.lane.b32.xlu1 %v1365_v40, %s1788_s8  ;;  %1426 = vrot.lane.b32.xlu0 %v1363_v41, %s1788_s8 }
 0x296   : > { %1422 = vrot.lane.b32.xlu2 %v1361_v35, %s1788_s8 }
 0x29d   : > { %1436 = vrot.lane.b32.xlu1 %v1368_v45, %s1788_s8  ;;  %1432 = vrot.lane.b32.xlu0 %v1366_v63, %s1788_s8 }
 0x29e   : > { %1428 = vrot.lane.b32.xlu2 %v1364_v0, %s1788_s8 }
 0x2a5   : > { %1442 = vrot.lane.b32.xlu1 %v1371_v6, %s1788_s8  ;;  %1438 = vrot.lane.b32.xlu0 %v1369_v47, %s1788_s8 }
 0x2a6   : > { %1434 = vrot.lane.b32.xlu2 %v1367_v50, %s1788_s8 }
 0x2ae   : > { %1440 = vrot.lane.b32.xlu2 %v1370_v31, %s1788_s8 }
 0x2c8   : > { %v1399_v59 = vpop.permute.xlu2 %1398 }
 0x2c9   : > { %1470 = vst.msk [vmem:[%s2730_s11 + $0x8] sm:$0xff] %vm1468_vm0, %v1399_v59 }
 0x2ce   : > { %v1401_v11 = vpop.permute.xlu1 %1400  ;;  %v1397_v52 = vpop.permute.xlu0 %1396 }
 0x2cf   : > { %1471 = vst.msk [vmem:[%s2730_s11 + $0x10] sm:$0xff] %vm1468_vm0, %v1401_v11 }
 0x2d0   : > { %1469 = vst.msk [vmem:[%s2730_s11] sm:$0xff] %vm1468_vm0, %v1397_v52  ;;  %v1405_v22 = vpop.permute.xlu2 %1404 }
 0x2d1   : > { %1473 = vst.msk [vmem:[%s2730_s11 + $0x20] sm:$0xff] %vm1468_vm0, %v1405_v22 }
 0x2d6   : > { %v1407_v20 = vpop.permute.xlu1 %1406 }
 0x2d7   : > { %1474 = vst.msk [vmem:[%s2730_s11 + $0x28] sm:$0xff] %vm1468_vm0, %v1407_v20 }
 0x2d8   : > { %v1411_v25 = vpop.permute.xlu2 %1410 }
 0x2d9   : > { %1476 = vst.msk [vmem:[%s2730_s11 + $0x38] sm:$0xff] %vm1468_vm0, %v1411_v25 }
 0x2da   : > { %v1403_v51 = vpop.permute.xlu0 %1402 }
 0x2db   : > { %1472 = vst.msk [vmem:[%s2730_s11 + $0x18] sm:$0xff] %vm1468_vm0, %v1403_v51 }
 0x2e0   : > { %v1417_v30 = vpop.permute.xlu2 %1416 }
 0x2e1   : > { %1479 = vst.msk [vmem:[%s2730_s11 + $0x50] sm:$0xff] %vm1468_vm0, %v1417_v30 }
 0x2ea   : > { %v1413_v48 = vpop.permute.xlu1 %1412  ;;  %v1409_v39 = vpop.permute.xlu0 %1408 }
 0x2eb   : > { %1477 = vst.msk [vmem:[%s2730_s11 + $0x40] sm:$0xff] %vm1468_vm0, %v1413_v48 }
 0x2ec   : > { %1475 = vst.msk [vmem:[%s2730_s11 + $0x30] sm:$0xff] %vm1468_vm0, %v1409_v39 }
 0x2f0   : > { %v1423_v12 = vpop.permute.xlu2 %1422 }
 0x2f1   : > { %1482 = vst.msk [vmem:[%s2730_s11 + $0x68] sm:$0xff] %vm1468_vm0, %v1423_v12 }
 0x2f2   : > { %v1419_v29 = vpop.permute.xlu1 %1418  ;;  %v1415_v28 = vpop.permute.xlu0 %1414 }
 0x2f3   : > { %1480 = vst.msk [vmem:[%s2730_s11 + $0x58] sm:$0xff] %vm1468_vm0, %v1419_v29 }
 0x2f4   : > { %1478 = vst.msk [vmem:[%s2730_s11 + $0x48] sm:$0xff] %vm1468_vm0, %v1415_v28 }
 0x2f8   : > { %v1429_v53 = vpop.permute.xlu2 %1428 }
 0x2f9   : > { %1485 = vst.msk [vmem:[%s2730_s11 + $0x80] sm:$0xff] %vm1468_vm0, %v1429_v53 }
 0x2fd   : > { %v1425_v14 = vpop.permute.xlu1 %1424  ;;  %v1421_v16 = vpop.permute.xlu0 %1420 }
 0x2fe   : > { %1483 = vst.msk [vmem:[%s2730_s11 + $0x70] sm:$0xff] %vm1468_vm0, %v1425_v14 }
 0x2ff   : > { %1481 = vst.msk [vmem:[%s2730_s11 + $0x60] sm:$0xff] %vm1468_vm0, %v1421_v16 }
 0x300   : > { %v1435_v32 = vpop.permute.xlu2 %1434 }
 0x301   : > { %1488 = vst.msk [vmem:[%s2730_s11 + $0x98] sm:$0xff] %vm1468_vm0, %v1435_v32 }
 0x307   : > { %v1431_v15 = vpop.permute.xlu1 %1430  ;;  %v1427_v56 = vpop.permute.xlu0 %1426 }
 0x308   : > { %1486 = vst.msk [vmem:[%s2730_s11 + $0x88] sm:$0xff] %vm1468_vm0, %v1431_v15  ;;  %v1441_v62 = vpop.permute.xlu2 %1440 }
 0x309   : > { %1491 = vst.msk [vmem:[%s2730_s11 + $0xb0] sm:$0xff] %vm1468_vm0, %v1441_v62 }
 0x30a   : > { %1484 = vst.msk [vmem:[%s2730_s11 + $0x78] sm:$0xff] %vm1468_vm0, %v1427_v56 }
 0x30f   : > { %v1437_v19 = vpop.permute.xlu1 %1436  ;;  %v1433_v5 = vpop.permute.xlu0 %1432 }
 0x310   : > { %1489 = vst.msk [vmem:[%s2730_s11 + $0xa0] sm:$0xff] %vm1468_vm0, %v1437_v19 }
 0x311   : > { %1487 = vst.msk [vmem:[%s2730_s11 + $0x90] sm:$0xff] %vm1468_vm0, %v1433_v5 }
 0x317   : > { %v1443_v58 = vpop.permute.xlu1 %1442  ;;  %v1439_v33 = vpop.permute.xlu0 %1438 }
 0x318   : > { %1492 = vst.msk [vmem:[%s2730_s11 + $0xb8] sm:$0xff] %vm1468_vm0, %v1443_v58 }
 0x319   : > { %1490 = vst.msk [vmem:[%s2730_s11 + $0xa8] sm:$0xff] %vm1468_vm0, %v1439_v33 }
 0x31a   : > { %1739 = shalt.err (!%p1736_p12)
}
 0x31b   : > { %s1789_s5 = smov 128   ;;  %s1790_s8 = smov 8  }
 0x31c   : > { %1621 = dma.vmem_to_hbm [thread:$0]  (%p1849_p5), %s1507_s25, 3072, %s1509_s26, %s1494_s16, %s1789_s5, %s1789_s5, %s1790_s8  }
 0x31d PF: > { %p1638_p13 = scmp.ge.s32.totalorder %s1782_s15, 2  ;;  %s1523_s9 = sand.u32 1, %s1770_s12  }
 0x31e   : > { %s1524_s10 = scalar_lea.sflag [#allocation3], %s1523_s9 }
 0x31f   : > { %p1631_p0 = pnand %p1638_p13, %p1853_p6 }
 0x321   : > { %p1632_p1 = pneg %p1631_p0 }
 0x323   : > { %1765 = dma.done.wait (%p1632_p1), %s1524_s10, 3072  }
 0x324   : > { %1767 = vsyncadd (%p1632_p1), %s1524_s10, 4294964224  ;;  %p15_p2 = scmp.ge.s32.totalorder %s1836_s18, 4   ;;  %s2830_s12 = smov %s1774_s13 }
 0x325   : > { %s2831_s13 = smov %s1778_s14  ;;  %s2832_s14 = smov %s1847_s21 }
 0x326   : > { %s2833_s15 = smov %s1836_s18  ;;  %17 = sbr.rel (!%p15_p2) target bundleno = 5 (0x5), region = 77 }
 0x32b   :  { %1530 = vsyncpa [#allocation3], 1 }
 0x32c   :  { %1532 = vsyncpa [#allocation3 + $0x1], 1 }
 0x32d   :  { %1533 = vsyncpa [#allocation4], 1 }
 0x32e   :  { %1535 = vsyncpa [#allocation4 + $0x1], 1 }
 0x32f   :  { %1536 = vsyncpa [#allocation6], 1 }

</bundles_post_ra>
